<compile_context>
chip_gen: v7x
topology: tpu7x:2x2x1
jax: 0.10.0
libtpu: 0.0.40
codegen_flags: <defaults>
</compile_context>

<pallas_src>
import math

import numpy as np
import jax
import jax.numpy as jnp
from jax import lax
from jax.experimental import pallas as pl
from jax.experimental.pallas import tpu as pltpu

TAU = 1.2      # MultiStepLIFNode(tau=1.2)
V_TH = 0.5     # v_threshold=0.5, v_reset=0.0 (hard reset), decay_input=True
ALPHA = 1.0 - 1.0 / TAU        # LIF decay:  v <- ALPHA*v + BETA*conv
BETA = 1.0 / TAU
# sigmoid(gate)*tanh(filt) on binary spikes == filt * (G0 + G1*gate); folded at trace time.
_TANH1 = math.tanh(1.0)
_SIG1 = 1.0 / (1.0 + math.exp(-1.0))
G0 = 0.5 * _TANH1
G1 = (_SIG1 - 0.5) * _TANH1
# TODO(synk): detach_reset / surrogate gradient only affect the backward pass; forward is exact.


def _snn_resblock_kernel(x_ref, aux_ref, wcat_ref, bc_ref, wsr_ref, bsr_ref,
                         res_ref, skip_ref, s_scratch, v_scratch):
    # x_ref:     (T, 1, C, TL)   one batch element, one L tile, all time steps (f32)
    # aux_ref:   (1, 1, C, 2T+1) lanes [0:T]  = left conv halos of y per t,
    #                            lanes [T:2T] = right conv halos of y per t,
    #                            lane  [2T]   = diffusion projection column (all f32)
    # wcat_ref:  (2C, 3C)        fused conv taps  [w_{l-1} | w_l | w_{l+1}]  (matmul dtype)
    # bc_ref:    (2C, 1)         conv bias (f32)
    # wsr_ref:   (2C, C)         fused 1x1 convs  [w_skip ; w_res]           (matmul dtype)
    # bsr_ref:   (2C, 1)         fused 1x1 bias   [b_skip ; b_res] (f32)
    # s_scratch: (3C, T*TL)      stacked conv operand (matmul dtype)
    # v_scratch: (2C, TL)        LIF membrane state (always f32)
    T = x_ref.shape[0]
    C = x_ref.shape[2]
    TL = x_ref.shape[3]
    N = T * TL
    op_dtype = s_scratch.dtype

    aux = aux_ref[0, 0]                         # (C, 2T+1)
    proj = aux[:, 2 * T:2 * T + 1]              # (C, 1), broadcasts over lanes

    # ---- stage 1a: centre taps y_l for every time step -> s_scratch rows [C:2C] ----
    # T is the SNN time-step count (small, <= 8 in practice); a static unroll keeps every
    # slice offset static / 128-aligned, and each iteration's tile is sunk by its store so
    # there is no live-range growth across iterations.
    # TODO(synk): for T >= 16 switch these loops to lax.fori_loop(unroll=2) with
    # pl.multiple_of(t*TL, 128) dynamic starts.
    for t in range(T):
        lo = t * TL
        s_scratch[C:2 * C, lo:lo + TL] = (x_ref[t, 0] + proj).astype(op_dtype)

    # ---- stage 1b: neighbour taps via two whole-slab lane rolls (XLU, not concats) ----
    yc = s_scratch[C:2 * C, :]                                   # (C, N)
    s_scratch[0:C, :] = pltpu.roll(yc, 1, axis=1)                # y_{l-1} taps
    s_scratch[2 * C:3 * C, :] = pltpu.roll(yc, N - 1, axis=1)    # y_{l+1} taps (shift -1)

    # ---- stage 1c: fix the 2T seam columns with the precomputed halos ----
    for t in range(T):
        lo = t * TL
        hi = lo + TL
        s_scratch[0:C, lo:lo + 1] = aux[:, t:t + 1].astype(op_dtype)                   # left halo
        s_scratch[2 * C:3 * C, hi - 1:hi] = aux[:, T + t:T + t + 1].astype(op_dtype)   # right halo

    # ---- stages 2-4, fused per time step: conv matmul -> LIF -> gating -> skip/res ----
    # The per-t conv matmul only depends on s_scratch, so once unrolled the scheduler can
    # overlap the MXU work of step t+1 with the serial LIF VPU chain of step t; the
    # skip/res matmul of step t is likewise independent of LIF step t+1.
    wcat = wcat_ref[...]
    wsr = wsr_ref[...]
    bc = bc_ref[...]
    bsr = bsr_ref[...]
    v_scratch[...] = jnp.zeros_like(v_scratch)                   # fresh state per (b, j) step
    for t in range(T):
        lo = t * TL
        conv_t = jnp.dot(wcat, s_scratch[:, lo:lo + TL],
                         preferred_element_type=jnp.float32) + bc            # (2C, TL) f32
        v = v_scratch[...] * ALPHA + conv_t * BETA               # charge (decay_input, v_reset=0)
        spk = v >= V_TH                                          # fire
        v_scratch[...] = jnp.where(spk, 0.0, v)                  # hard reset (f32 state)
        sf = spk.astype(jnp.float32)
        g = sf[C:, :] * (G0 + G1 * sf[:C, :])                    # sigmoid(gate)*tanh(filt), folded
        sr = jnp.dot(wsr, g.astype(op_dtype),
                     preferred_element_type=jnp.float32) + bsr               # rows [0:C]=skip, [C:2C]=res
        skip_ref[t, 0] = sr[:C, :].astype(skip_ref.dtype)
        res_ref[t, 0] = (x_ref[t, 0] + sr[C:, :]).astype(res_ref.dtype)


def _vmem_bytes_estimate(T, C, TL, op_itemsize):
    """Rough per-grid-step VMEM footprint (double-buffered blocks + scratch)."""
    n = T * TL
    io_blocks = 2 * 3 * T * C * TL * 4                 # x, res, skip blocks (f32, double-buffered)
    aux_block = 2 * max(C, 8) * 128 * 4                # aux block, lane-padded to 128
    weights = 2 * (2 * C * 3 * C + 2 * C * C) * op_itemsize + 2 * 4 * C * 4
    scratch = 3 * C * n * op_itemsize + 2 * C * TL * 4
    return io_blocks + aux_block + weights + scratch


def _vmem_cap_bytes():
    """Per-TensorCore VMEM capacity; conservative (v7x) fallback if the query fails."""
    try:
        cap = getattr(pltpu.get_tpu_info(), "vmem_capacity_bytes", None)
        if cap:
            return int(cap)
    except Exception:
        pass
    return 64 * 1024 * 1024


def _pick_tile_l(L, T, C, op_itemsize, budget_bytes, target=2048):
    """Largest lane tile (multiple of 128 dividing L) whose footprint fits the budget."""
    if L % 128 != 0:
        return L
    tl = min(target, L)
    tl -= tl % 128
    while tl > 128 and (L % tl != 0 or
                        _vmem_bytes_estimate(T, C, tl, op_itemsize) > budget_bytes):
        tl -= 128
    return tl


def multistep_snn_residual_block(x, diffusion_step, params, tile_l=None,
                                 matmul_dtype=jnp.float32):
    """matmul_dtype=jnp.bfloat16 is the v6e/v7x fast path (MXU operands only; LIF stays f32)."""
    T, B, C, L = x.shape
    x = x.astype(jnp.float32)

    # --- glue (tiny [B, C] math): diffusion embedding MLP + projection ---
    d = diffusion_step.reshape(B, 1).astype(jnp.float32)
    e = jax.nn.silu(d @ params["w_e1"].T + params["b_e1"])
    e = e @ params["w_e2"].T + params["b_e2"]
    proj = e @ params["w_dp"].T + params["b_dp"]             # (B, C)

    op_itemsize = jnp.dtype(matmul_dtype).itemsize
    budget = (_vmem_cap_bytes() * 3) // 4                    # leave headroom for Mosaic scratch
    TL = tile_l if tile_l is not None else _pick_tile_l(L, T, C, op_itemsize, budget)
    assert L % TL == 0, (L, TL)
    nL = L // TL
    # NOTE: on v7x (2 TensorCores) keep B*nL >= 2 and even so both cores get work.

    # --- conv halos of y = x + proj at L-tile seams (zeros at the global boundaries =
    #     the conv's zero padding), packed lane-dense together with the proj column:
    #       aux[b, j, :, t]     = y[t, b, :, j*TL - 1]
    #       aux[b, j, :, T + t] = y[t, b, :, (j+1)*TL]
    #       aux[b, j, :, 2*T]   = proj[b, :]
    xr = x.reshape(T, B, C, nL, TL)
    pb = proj[None, :, :, None]
    first_col = xr[..., 0] + pb                              # (T, B, C, nL)
    last_col = xr[..., TL - 1] + pb                          # (T, B, C, nL)
    zeros = jnp.zeros((T, B, C, 1), jnp.float32)
    left = jnp.concatenate([zeros, last_col[..., :-1]], axis=-1)     # y at col j*TL-1
    right = jnp.concatenate([first_col[..., 1:], zeros], axis=-1)    # y at col (j+1)*TL
    left = jnp.transpose(left, (1, 3, 2, 0))                 # (B, nL, C, T)
    right = jnp.transpose(right, (1, 3, 2, 0))               # (B, nL, C, T)
    proj_col = jnp.broadcast_to(proj[:, None, :, None], (B, nL, C, 1))
    aux = jnp.concatenate([left, right, proj_col], axis=-1)  # (B, nL, C, 2T+1)

    # --- fused weights (built once in the wrapper, not per grid step) ---
    wcat = jnp.concatenate([params["w_conv"][:, :, k] for k in range(3)],
                           axis=1).astype(matmul_dtype)                                   # (2C, 3C)
    bc = params["b_conv"][:, None].astype(jnp.float32)                                    # (2C, 1)
    wsr = jnp.concatenate([params["w_skip"][:, :, 0], params["w_res"][:, :, 0]],
                          axis=0).astype(matmul_dtype)                                    # (2C, C)
    bsr = jnp.concatenate([params["b_skip"], params["b_res"]])[:, None].astype(jnp.float32)

    est = _vmem_bytes_estimate(T, C, TL, op_itemsize)
    vmem_limit = int(min(budget, max(2 * est, 32 * 1024 * 1024)))

    x_spec = pl.BlockSpec((T, 1, C, TL), lambda b, j: (0, b, 0, j))
    out_shape = (jax.ShapeDtypeStruct((T, B, C, L), x.dtype),
                 jax.ShapeDtypeStruct((T, B, C, L), x.dtype))

    # NOTE: at small C the kernel is VPU/XLU-bound (MXU M=2C, K<=3C underfills 256-wide MXU);
    # the cost estimate is advisory only.
    flops = 2 * T * B * L * (2 * C * 3 * C + 2 * C * C)
    bytes_accessed = 4 * T * B * C * L * 3

    res, skip = pl.pallas_call(
        _snn_resblock_kernel,
        out_shape=out_shape,
        grid_spec=pltpu.PrefetchScalarGridSpec(
            num_scalar_prefetch=0,
            grid=(B, nL),
            in_specs=[
                x_spec,
                pl.BlockSpec((1, 1, C, 2 * T + 1), lambda b, j: (b, j, 0, 0)),
                pl.BlockSpec((2 * C, 3 * C), lambda b, j: (0, 0)),
                pl.BlockSpec((2 * C, 1), lambda b, j: (0, 0)),
                pl.BlockSpec((2 * C, C), lambda b, j: (0, 0)),
                pl.BlockSpec((2 * C, 1), lambda b, j: (0, 0)),
            ],
            out_specs=[x_spec, x_spec],
            scratch_shapes=[
                pltpu.VMEM((3 * C, T * TL), matmul_dtype),   # stacked conv operand
                pltpu.VMEM((2 * C, TL), jnp.float32),        # LIF membrane state
            ],
        ),
        compiler_params=pltpu.CompilerParams(
            dimension_semantics=("parallel", "parallel"),
            vmem_limit_bytes=vmem_limit),
        cost_estimate=pl.CostEstimate(flops=flops, transcendentals=0,
                                      bytes_accessed=bytes_accessed),
    )(x, aux, wcat, bc, wsr, bsr)
    return res, skip


def init_params(key, channels, diffusion_channels=None, kernel_size=3):
    # Deterministic synthetic init (PyTorch-style uniform(-1/sqrt(fan_in), 1/sqrt(fan_in))).
    if diffusion_channels is None:
        diffusion_channels = channels
    C = channels
    ks = jax.random.split(key, 12)

    def u(k, shape, fan_in):
        bound = 1.0 / np.sqrt(fan_in)
        return jax.random.uniform(k, shape, jnp.float32, -bound, bound)

    return {
        "w_dp": u(ks[0], (C, diffusion_channels), diffusion_channels),
        "b_dp": u(ks[1], (C,), diffusion_channels),
        "w_conv": u(ks[2], (2 * C, C, kernel_size), C * kernel_size),
        "b_conv": u(ks[3], (2 * C,), C * kernel_size),
        "w_skip": u(ks[4], (C, C, 1), C),
        "b_skip": u(ks[5], (C,), C),
        "w_res": u(ks[6], (C, C, 1), C),
        "b_res": u(ks[7], (C,), C),
        "w_e1": u(ks[8], (C, 1), 1),
        "b_e1": u(ks[9], (C,), 1),
        "w_e2": u(ks[10], (C, C), C),
        "b_e2": u(ks[11], (C,), C),
    }


def reference(x, diffusion_step, params):
    # Pure-JAX reference of the PyTorch forward.
    T, B, C, L = x.shape
    d = diffusion_step.reshape(B, 1).astype(jnp.float32)
    e = jax.nn.silu(d @ params["w_e1"].T + params["b_e1"])
    e = e @ params["w_e2"].T + params["b_e2"]
    proj = e @ params["w_dp"].T + params["b_dp"]                    # (B, C)

    y = x + proj[None, :, :, None]
    yr = y.reshape(T * B, C, L)
    conv = lax.conv_general_dilated(
        yr, params["w_conv"], window_strides=(1,), padding=((1, 1),),
        dimension_numbers=("NCH", "OIH", "NCH"),
        precision=lax.Precision.HIGHEST) + params["b_conv"][None, :, None]
    conv = conv.reshape(T, B, 2 * C, L)

    def step(v, ct):
        v = v + (ct - v) / TAU
        s = (v >= V_TH).astype(jnp.float32)
        return (1.0 - s) * v, s

    _, spikes = lax.scan(step, jnp.zeros((B, 2 * C, L), jnp.float32), conv)
    gate, filt = spikes[:, :, :C], spikes[:, :, C:]
    g = jax.nn.sigmoid(gate) * jnp.tanh(filt)
    skip = jnp.einsum("oc,tbcl->tbol", params["w_skip"][:, :, 0], g,
                      precision=lax.Precision.HIGHEST) + params["b_skip"][None, None, :, None]
    res = jnp.einsum("oc,tbcl->tbol", params["w_res"][:, :, 0], g,
                     precision=lax.Precision.HIGHEST) + params["b_res"][None, None, :, None]
    return x + res, skip


if __name__ == "__main__":
    key = jax.random.PRNGKey(0)
    kx, kd, kp = jax.random.split(key, 3)
    T, B, C, L = 4, 2, 16, 256                    # small shapes: [T, B, C, L]
    params = init_params(kp, C)
    x = jax.random.normal(kx, (T, B, C, L), jnp.float32)
    diffusion_step = jax.random.randint(kd, (B,), 0, 50)

    # f32 matmul operands: matches the pure-JAX reference up to rounding.
    # tile_l=128 -> 2 lane-tiles per batch element, exercising the conv halo at the tile
    # seam and giving an even B*nL grid (keeps both v7x TensorCores busy).
    res, skip = jax.block_until_ready(
        multistep_snn_residual_block(x, diffusion_step, params, tile_l=128))

    res_ref, skip_ref = reference(x, diffusion_step, params)
    for a, b in ((res, res_ref), (skip, skip_ref)):
        assert a.shape == b.shape
        frac_bad = float(jnp.mean((jnp.abs(a - b) > 1e-3).astype(jnp.float32)))
        assert frac_bad < 0.01, frac_bad

    # bf16 matmul-operand variant (the v6e/v7x fast path).  LIF state / threshold math is
    # still f32 in-kernel; bf16 only changes MXU operand precision, which can flip spikes
    # that land exactly at the threshold, so only sanity-check this path.
    res_bf, skip_bf = jax.block_until_ready(
        multistep_snn_residual_block(x, diffusion_step, params, tile_l=128,
                                     matmul_dtype=jnp.bfloat16))
    assert res_bf.shape == res.shape and skip_bf.shape == skip.shape
    assert bool(jnp.isfinite(res_bf).all()) and bool(jnp.isfinite(skip_bf).all())

    print("KERNEL_OK")
</pallas_src>

<mosaic_0001>
module attributes {stable_mosaic.version = 11 : i64} {
  func.func @_snn_resblock_kernel(%arg0: i32, %arg1: i32, %arg2: memref<4x1x16x128xf32, #tpu.memory_space<vmem>>, %arg3: memref<1x1x16x9xf32, #tpu.memory_space<vmem>>, %arg4: memref<32x48xf32, #tpu.memory_space<vmem>>, %arg5: memref<32x1xf32, #tpu.memory_space<vmem>>, %arg6: memref<32x16xf32, #tpu.memory_space<vmem>>, %arg7: memref<32x1xf32, #tpu.memory_space<vmem>>, %arg8: memref<4x1x16x128xf32, #tpu.memory_space<vmem>>, %arg9: memref<4x1x16x128xf32, #tpu.memory_space<vmem>>, %arg10: memref<48x512xf32, #tpu.memory_space<vmem>>, %arg11: memref<32x128xf32, #tpu.memory_space<vmem>>) attributes {dimension_semantics = [#tpu.dimension_semantics<parallel>, #tpu.dimension_semantics<parallel>], iteration_bounds = array<i64: 2, 2>, scalar_prefetch = 0 : i64, scratch_operands = 2 : i64, tpu.core_type = #tpu.core_type<tc>, window_params = [{transform_indices = @transform_0, window_bounds = array<i64: 4, 1, 16, 128>}, {transform_indices = @transform_1, window_bounds = array<i64: 1, 1, 16, 9>}, {pipeline_mode = #tpu.pipeline_mode<synchronous>, transform_indices = @transform_2, window_bounds = array<i64: 32, 48>}, {pipeline_mode = #tpu.pipeline_mode<synchronous>, transform_indices = @transform_3, window_bounds = array<i64: 32, 1>}, {pipeline_mode = #tpu.pipeline_mode<synchronous>, transform_indices = @transform_4, window_bounds = array<i64: 32, 16>}, {pipeline_mode = #tpu.pipeline_mode<synchronous>, transform_indices = @transform_5, window_bounds = array<i64: 32, 1>}, {transform_indices = @transform_6, window_bounds = array<i64: 4, 1, 16, 128>}, {transform_indices = @transform_7, window_bounds = array<i64: 4, 1, 16, 128>}]} {
    %c0 = arith.constant 0 : index
    %c0_0 = arith.constant 0 : index
    %c0_1 = arith.constant 0 : index
    %c0_2 = arith.constant 0 : index
    %0 = vector.load %arg3[%c0, %c0_0, %c0_1, %c0_2] : memref<1x1x16x9xf32, #tpu.memory_space<vmem>>, vector<1x1x16x9xf32>
    %1 = vector.shape_cast %0 : vector<1x1x16x9xf32> to vector<16x9xf32>
    %2 = vector.extract_strided_slice %1 {offsets = [0, 8], sizes = [16, 1], strides = [1, 1]} : vector<16x9xf32> to vector<16x1xf32>
    %c0_3 = arith.constant 0 : index
    %c0_4 = arith.constant 0 : index
    %c0_5 = arith.constant 0 : index
    %c0_6 = arith.constant 0 : index
    %3 = vector.load %arg2[%c0_3, %c0_4, %c0_5, %c0_6] : memref<4x1x16x128xf32, #tpu.memory_space<vmem>>, vector<1x1x16x128xf32>
    %4 = vector.shape_cast %3 : vector<1x1x16x128xf32> to vector<16x128xf32>
    %5 = vector.broadcast %2 : vector<16x1xf32> to vector<16x128xf32>
    %6 = arith.addf %4, %5 : vector<16x128xf32>
    %c16 = arith.constant 16 : index
    %c0_7 = arith.constant 0 : index
    %7 = vector.load %arg10[%c16, %c0_7] : memref<48x512xf32, #tpu.memory_space<vmem>>, vector<16x128xf32>
    tpu.vector_store %arg10[%c16, %c0_7], %6 {strides = array<i32>} : memref<48x512xf32, #tpu.memory_space<vmem>>, vector<16x128xf32>,
    %c1 = arith.constant 1 : index
    %c0_8 = arith.constant 0 : index
    %c0_9 = arith.constant 0 : index
    %c0_10 = arith.constant 0 : index
    %8 = vector.load %arg2[%c1, %c0_8, %c0_9, %c0_10] : memref<4x1x16x128xf32, #tpu.memory_space<vmem>>, vector<1x1x16x128xf32>
    %9 = vector.shape_cast %8 : vector<1x1x16x128xf32> to vector<16x128xf32>
    %10 = vector.broadcast %2 : vector<16x1xf32> to vector<16x128xf32>
    %11 = arith.addf %9, %10 : vector<16x128xf32>
    %c16_11 = arith.constant 16 : index
    %c128 = arith.constant 128 : index
    %12 = vector.load %arg10[%c16_11, %c128] : memref<48x512xf32, #tpu.memory_space<vmem>>, vector<16x128xf32>
    tpu.vector_store %arg10[%c16_11, %c128], %11 {strides = array<i32>} : memref<48x512xf32, #tpu.memory_space<vmem>>, vector<16x128xf32>,
    %c2 = arith.constant 2 : index
    %c0_12 = arith.constant 0 : index
    %c0_13 = arith.constant 0 : index
    %c0_14 = arith.constant 0 : index
    %13 = vector.load %arg2[%c2, %c0_12, %c0_13, %c0_14] : memref<4x1x16x128xf32, #tpu.memory_space<vmem>>, vector<1x1x16x128xf32>
    %14 = vector.shape_cast %13 : vector<1x1x16x128xf32> to vector<16x128xf32>
    %15 = vector.broadcast %2 : vector<16x1xf32> to vector<16x128xf32>
    %16 = arith.addf %14, %15 : vector<16x128xf32>
    %c16_15 = arith.constant 16 : index
    %c256 = arith.constant 256 : index
    %17 = vector.load %arg10[%c16_15, %c256] : memref<48x512xf32, #tpu.memory_space<vmem>>, vector<16x128xf32>
    tpu.vector_store %arg10[%c16_15, %c256], %16 {strides = array<i32>} : memref<48x512xf32, #tpu.memory_space<vmem>>, vector<16x128xf32>,
    %c3 = arith.constant 3 : index
    %c0_16 = arith.constant 0 : index
    %c0_17 = arith.constant 0 : index
    %c0_18 = arith.constant 0 : index
    %18 = vector.load %arg2[%c3, %c0_16, %c0_17, %c0_18] : memref<4x1x16x128xf32, #tpu.memory_space<vmem>>, vector<1x1x16x128xf32>
    %19 = vector.shape_cast %18 : vector<1x1x16x128xf32> to vector<16x128xf32>
    %20 = vector.broadcast %2 : vector<16x1xf32> to vector<16x128xf32>
    %21 = arith.addf %19, %20 : vector<16x128xf32>
    %c16_19 = arith.constant 16 : index
    %c384 = arith.constant 384 : index
    %22 = vector.load %arg10[%c16_19, %c384] : memref<48x512xf32, #tpu.memory_space<vmem>>, vector<16x128xf32>
    tpu.vector_store %arg10[%c16_19, %c384], %21 {strides = array<i32>} : memref<48x512xf32, #tpu.memory_space<vmem>>, vector<16x128xf32>,
    %c16_20 = arith.constant 16 : index
    %c0_21 = arith.constant 0 : index
    %23 = vector.load %arg10[%c16_20, %c0_21] : memref<48x512xf32, #tpu.memory_space<vmem>>, vector<16x512xf32>
    %c1_i32 = arith.constant 1 : i32
    %24 = tpu.dynamic_rotate %23 by %c1_i32 dim 1 : vector<16x512xf32>, i32 -> vector<16x512xf32>
    %c0_22 = arith.constant 0 : index
    %c0_23 = arith.constant 0 : index
    %25 = vector.load %arg10[%c0_22, %c0_23] : memref<48x512xf32, #tpu.memory_space<vmem>>, vector<16x512xf32>
    tpu.vector_store %arg10[%c0_22, %c0_23], %24 {strides = array<i32>} : memref<48x512xf32, #tpu.memory_space<vmem>>, vector<16x512xf32>,
    %c511_i32 = arith.constant 511 : i32
    %26 = tpu.dynamic_rotate %23 by %c511_i32 dim 1 : vector<16x512xf32>, i32 -> vector<16x512xf32>
    %c32 = arith.constant 32 : index
    %c0_24 = arith.constant 0 : index
    %27 = vector.load %arg10[%c32, %c0_24] : memref<48x512xf32, #tpu.memory_space<vmem>>, vector<16x512xf32>
    tpu.vector_store %arg10[%c32, %c0_24], %26 {strides = array<i32>} : memref<48x512xf32, #tpu.memory_space<vmem>>, vector<16x512xf32>,
    %28 = vector.extract_strided_slice %1 {offsets = [0, 0], sizes = [16, 1], strides = [1, 1]} : vector<16x9xf32> to vector<16x1xf32>
    %c0_25 = arith.constant 0 : index
    %c0_26 = arith.constant 0 : index
    %29 = vector.load %arg10[%c0_25, %c0_26] : memref<48x512xf32, #tpu.memory_space<vmem>>, vector<16x1xf32>
    tpu.vector_store %arg10[%c0_25, %c0_26], %28 {strides = array<i32>} : memref<48x512xf32, #tpu.memory_space<vmem>>, vector<16x1xf32>,
    %30 = vector.extract_strided_slice %1 {offsets = [0, 4], sizes = [16, 1], strides = [1, 1]} : vector<16x9xf32> to vector<16x1xf32>
    %c32_27 = arith.constant 32 : index
    %c127 = arith.constant 127 : index
    %31 = vector.load %arg10[%c32_27, %c127] : memref<48x512xf32, #tpu.memory_space<vmem>>, vector<16x1xf32>
    tpu.vector_store %arg10[%c32_27, %c127], %30 {strides = array<i32>} : memref<48x512xf32, #tpu.memory_space<vmem>>, vector<16x1xf32>,
    %32 = vector.extract_strided_slice %1 {offsets = [0, 1], sizes = [16, 1], strides = [1, 1]} : vector<16x9xf32> to vector<16x1xf32>
    %c0_28 = arith.constant 0 : index
    %c128_29 = arith.constant 128 : index
    %33 = vector.load %arg10[%c0_28, %c128_29] : memref<48x512xf32, #tpu.memory_space<vmem>>, vector<16x1xf32>
    tpu.vector_store %arg10[%c0_28, %c128_29], %32 {strides = array<i32>} : memref<48x512xf32, #tpu.memory_space<vmem>>, vector<16x1xf32>,
    %34 = vector.extract_strided_slice %1 {offsets = [0, 5], sizes = [16, 1], strides = [1, 1]} : vector<16x9xf32> to vector<16x1xf32>
    %c32_30 = arith.constant 32 : index
    %c255 = arith.constant 255 : index
    %35 = vector.load %arg10[%c32_30, %c255] : memref<48x512xf32, #tpu.memory_space<vmem>>, vector<16x1xf32>
    tpu.vector_store %arg10[%c32_30, %c255], %34 {strides = array<i32>} : memref<48x512xf32, #tpu.memory_space<vmem>>, vector<16x1xf32>,
    %36 = vector.extract_strided_slice %1 {offsets = [0, 2], sizes = [16, 1], strides = [1, 1]} : vector<16x9xf32> to vector<16x1xf32>
    %c0_31 = arith.constant 0 : index
    %c256_32 = arith.constant 256 : index
    %37 = vector.load %arg10[%c0_31, %c256_32] : memref<48x512xf32, #tpu.memory_space<vmem>>, vector<16x1xf32>
    tpu.vector_store %arg10[%c0_31, %c256_32], %36 {strides = array<i32>} : memref<48x512xf32, #tpu.memory_space<vmem>>, vector<16x1xf32>,
    %38 = vector.extract_strided_slice %1 {offsets = [0, 6], sizes = [16, 1], strides = [1, 1]} : vector<16x9xf32> to vector<16x1xf32>
    %c32_33 = arith.constant 32 : index
    %c383 = arith.constant 383 : index
    %39 = vector.load %arg10[%c32_33, %c383] : memref<48x512xf32, #tpu.memory_space<vmem>>, vector<16x1xf32>
    tpu.vector_store %arg10[%c32_33, %c383], %38 {strides = array<i32>} : memref<48x512xf32, #tpu.memory_space<vmem>>, vector<16x1xf32>,
    %40 = vector.extract_strided_slice %1 {offsets = [0, 3], sizes = [16, 1], strides = [1, 1]} : vector<16x9xf32> to vector<16x1xf32>
    %c0_34 = arith.constant 0 : index
    %c384_35 = arith.constant 384 : index
    %41 = vector.load %arg10[%c0_34, %c384_35] : memref<48x512xf32, #tpu.memory_space<vmem>>, vector<16x1xf32>
    tpu.vector_store %arg10[%c0_34, %c384_35], %40 {strides = array<i32>} : memref<48x512xf32, #tpu.memory_space<vmem>>, vector<16x1xf32>,
    %42 = vector.extract_strided_slice %1 {offsets = [0, 7], sizes = [16, 1], strides = [1, 1]} : vector<16x9xf32> to vector<16x1xf32>
    %c32_36 = arith.constant 32 : index
    %c511 = arith.constant 511 : index
    %43 = vector.load %arg10[%c32_36, %c511] : memref<48x512xf32, #tpu.memory_space<vmem>>, vector<16x1xf32>
    tpu.vector_store %arg10[%c32_36, %c511], %42 {strides = array<i32>} : memref<48x512xf32, #tpu.memory_space<vmem>>, vector<16x1xf32>,
    %c0_37 = arith.constant 0 : index
    %c0_38 = arith.constant 0 : index
    %44 = vector.load %arg4[%c0_37, %c0_38] : memref<32x48xf32, #tpu.memory_space<vmem>>, vector<32x48xf32>
    %c0_39 = arith.constant 0 : index
    %c0_40 = arith.constant 0 : index
    %45 = vector.load %arg6[%c0_39, %c0_40] : memref<32x16xf32, #tpu.memory_space<vmem>>, vector<32x16xf32>
    %c0_41 = arith.constant 0 : index
    %c0_42 = arith.constant 0 : index
    %46 = vector.load %arg5[%c0_41, %c0_42] : memref<32x1xf32, #tpu.memory_space<vmem>>, vector<32x1xf32>
    %c0_43 = arith.constant 0 : index
    %c0_44 = arith.constant 0 : index
    %47 = vector.load %arg7[%c0_43, %c0_44] : memref<32x1xf32, #tpu.memory_space<vmem>>, vector<32x1xf32>
    %cst = arith.constant 0.000000e+00 : f32
    %48 = vector.broadcast %cst : f32 to vector<32x128xf32>
    %c0_45 = arith.constant 0 : index
    %c0_46 = arith.constant 0 : index
    %49 = vector.load %arg11[%c0_45, %c0_46] : memref<32x128xf32, #tpu.memory_space<vmem>>, vector<32x128xf32>
    tpu.vector_store %arg11[%c0_45, %c0_46], %48 {strides = array<i32>} : memref<32x128xf32, #tpu.memory_space<vmem>>, vector<32x128xf32>,
    %c0_47 = arith.constant 0 : index
    %c0_48 = arith.constant 0 : index
    %50 = vector.load %arg10[%c0_47, %c0_48] : memref<48x512xf32, #tpu.memory_space<vmem>>, vector<48x128xf32>
    %cst_49 = arith.constant dense<0.000000e+00> : vector<32x128xf32>
    %51 = tpu.matmul %44, %50, %cst_49 {dimension_numbers = #tpu.dot_dimension_numbers<[1], [0], [0], [1], [0, 0, 1, 1], [], []>} : vector<32x48xf32>, vector<48x128xf32>, vector<32x128xf32> -> vector<32x128xf32>
    %52 = vector.broadcast %46 : vector<32x1xf32> to vector<32x128xf32>
    %53 = arith.addf %51, %52 : vector<32x128xf32>
    %c0_50 = arith.constant 0 : index
    %c0_51 = arith.constant 0 : index
    %54 = vector.load %arg11[%c0_50, %c0_51] : memref<32x128xf32, #tpu.memory_space<vmem>>, vector<32x128xf32>
    %cst_52 = arith.constant 0.166666672 : f32
    %55 = vector.broadcast %cst_52 : f32 to vector<32x128xf32>
    %56 = arith.mulf %54, %55 : vector<32x128xf32>
    %cst_53 = arith.constant 0.833333313 : f32
    %57 = vector.broadcast %cst_53 : f32 to vector<32x128xf32>
    %58 = arith.mulf %53, %57 : vector<32x128xf32>
    %59 = arith.addf %56, %58 : vector<32x128xf32>
    %cst_54 = arith.constant 5.000000e-01 : f32
    %60 = vector.broadcast %cst_54 : f32 to vector<32x128xf32>
    %61 = arith.cmpf oge, %59, %60 : vector<32x128xf32>
    %cst_55 = arith.constant 0.000000e+00 : f32
    %62 = vector.broadcast %cst_55 : f32 to vector<32x128xf32>
    %63 = arith.select %61, %62, %59 : vector<32x128xi1>, vector<32x128xf32>
    %c0_56 = arith.constant 0 : index
    %c0_57 = arith.constant 0 : index
    %64 = vector.load %arg11[%c0_56, %c0_57] : memref<32x128xf32, #tpu.memory_space<vmem>>, vector<32x128xf32>
    tpu.vector_store %arg11[%c0_56, %c0_57], %63 {strides = array<i32>} : memref<32x128xf32, #tpu.memory_space<vmem>>, vector<32x128xf32>,
    %65 = arith.extui %61 : vector<32x128xi1> to vector<32x128xi32>
    %66 = arith.sitofp %65 : vector<32x128xi32> to vector<32x128xf32>
    %67 = vector.extract_strided_slice %66 {offsets = [16, 0], sizes = [16, 128], strides = [1, 1]} : vector<32x128xf32> to vector<16x128xf32>
    %68 = vector.extract_strided_slice %66 {offsets = [0, 0], sizes = [16, 128], strides = [1, 1]} : vector<32x128xf32> to vector<16x128xf32>
    %cst_58 = arith.constant 0.175972864 : f32
    %69 = vector.broadcast %cst_58 : f32 to vector<16x128xf32>
    %70 = arith.mulf %69, %68 : vector<16x128xf32>
    %cst_59 = arith.constant 0.380797088 : f32
    %71 = vector.broadcast %cst_59 : f32 to vector<16x128xf32>
    %72 = arith.addf %71, %70 : vector<16x128xf32>
    %73 = arith.mulf %67, %72 : vector<16x128xf32>
    %cst_60 = arith.constant dense<0.000000e+00> : vector<32x128xf32>
    %74 = tpu.matmul %45, %73, %cst_60 {dimension_numbers = #tpu.dot_dimension_numbers<[1], [0], [0], [1], [0, 0, 1, 1], [], []>} : vector<32x16xf32>, vector<16x128xf32>, vector<32x128xf32> -> vector<32x128xf32>
    %75 = vector.broadcast %47 : vector<32x1xf32> to vector<32x128xf32>
    %76 = arith.addf %74, %75 : vector<32x128xf32>
    %77 = vector.extract_strided_slice %76 {offsets = [0, 0], sizes = [16, 128], strides = [1, 1]} : vector<32x128xf32> to vector<16x128xf32>
    %c0_61 = arith.constant 0 : index
    %c0_62 = arith.constant 0 : index
    %c0_63 = arith.constant 0 : index
    %c0_64 = arith.constant 0 : index
    %78 = vector.load %arg9[%c0_61, %c0_62, %c0_63, %c0_64] : memref<4x1x16x128xf32, #tpu.memory_space<vmem>>, vector<1x1x16x128xf32>
    %79 = vector.shape_cast %78 : vector<1x1x16x128xf32> to vector<16x128xf32>
    %80 = vector.shape_cast %77 : vector<16x128xf32> to vector<1x1x16x128xf32>
    tpu.vector_store %arg9[%c0_61, %c0_62, %c0_63, %c0_64], %80 {strides = array<i32>} : memref<4x1x16x128xf32, #tpu.memory_space<vmem>>, vector<1x1x16x128xf32>,
    %c0_65 = arith.constant 0 : index
    %c0_66 = arith.constant 0 : index
    %c0_67 = arith.constant 0 : index
    %c0_68 = arith.constant 0 : index
    %81 = vector.load %arg2[%c0_65, %c0_66, %c0_67, %c0_68] : memref<4x1x16x128xf32, #tpu.memory_space<vmem>>, vector<1x1x16x128xf32>
    %82 = vector.shape_cast %81 : vector<1x1x16x128xf32> to vector<16x128xf32>
    %83 = vector.extract_strided_slice %76 {offsets = [16, 0], sizes = [16, 128], strides = [1, 1]} : vector<32x128xf32> to vector<16x128xf32>
    %84 = arith.addf %82, %83 : vector<16x128xf32>
    %c0_69 = arith.constant 0 : index
    %c0_70 = arith.constant 0 : index
    %c0_71 = arith.constant 0 : index
    %c0_72 = arith.constant 0 : index
    %85 = vector.load %arg8[%c0_69, %c0_70, %c0_71, %c0_72] : memref<4x1x16x128xf32, #tpu.memory_space<vmem>>, vector<1x1x16x128xf32>
    %86 = vector.shape_cast %85 : vector<1x1x16x128xf32> to vector<16x128xf32>
    %87 = vector.shape_cast %84 : vector<16x128xf32> to vector<1x1x16x128xf32>
    tpu.vector_store %arg8[%c0_69, %c0_70, %c0_71, %c0_72], %87 {strides = array<i32>} : memref<4x1x16x128xf32, #tpu.memory_space<vmem>>, vector<1x1x16x128xf32>,
    %c0_73 = arith.constant 0 : index
    %c128_74 = arith.constant 128 : index
    %88 = vector.load %arg10[%c0_73, %c128_74] : memref<48x512xf32, #tpu.memory_space<vmem>>, vector<48x128xf32>
    %cst_75 = arith.constant dense<0.000000e+00> : vector<32x128xf32>
    %89 = tpu.matmul %44, %88, %cst_75 {dimension_numbers = #tpu.dot_dimension_numbers<[1], [0], [0], [1], [0, 0, 1, 1], [], []>} : vector<32x48xf32>, vector<48x128xf32>, vector<32x128xf32> -> vector<32x128xf32>
    %90 = vector.broadcast %46 : vector<32x1xf32> to vector<32x128xf32>
    %91 = arith.addf %89, %90 : vector<32x128xf32>
    %c0_76 = arith.constant 0 : index
    %c0_77 = arith.constant 0 : index
    %92 = vector.load %arg11[%c0_76, %c0_77] : memref<32x128xf32, #tpu.memory_space<vmem>>, vector<32x128xf32>
    %cst_78 = arith.constant 0.166666672 : f32
    %93 = vector.broadcast %cst_78 : f32 to vector<32x128xf32>
    %94 = arith.mulf %92, %93 : vector<32x128xf32>
    %cst_79 = arith.constant 0.833333313 : f32
    %95 = vector.broadcast %cst_79 : f32 to vector<32x128xf32>
    %96 = arith.mulf %91, %95 : vector<32x128xf32>
    %97 = arith.addf %94, %96 : vector<32x128xf32>
    %cst_80 = arith.constant 5.000000e-01 : f32
    %98 = vector.broadcast %cst_80 : f32 to vector<32x128xf32>
    %99 = arith.cmpf oge, %97, %98 : vector<32x128xf32>
    %cst_81 = arith.constant 0.000000e+00 : f32
    %100 = vector.broadcast %cst_81 : f32 to vector<32x128xf32>
    %101 = arith.select %99, %100, %97 : vector<32x128xi1>, vector<32x128xf32>
    %c0_82 = arith.constant 0 : index
    %c0_83 = arith.constant 0 : index
    %102 = vector.load %arg11[%c0_82, %c0_83] : memref<32x128xf32, #tpu.memory_space<vmem>>, vector<32x128xf32>
    tpu.vector_store %arg11[%c0_82, %c0_83], %101 {strides = array<i32>} : memref<32x128xf32, #tpu.memory_space<vmem>>, vector<32x128xf32>,
    %103 = arith.extui %99 : vector<32x128xi1> to vector<32x128xi32>
    %104 = arith.sitofp %103 : vector<32x128xi32> to vector<32x128xf32>
    %105 = vector.extract_strided_slice %104 {offsets = [16, 0], sizes = [16, 128], strides = [1, 1]} : vector<32x128xf32> to vector<16x128xf32>
    %106 = vector.extract_strided_slice %104 {offsets = [0, 0], sizes = [16, 128], strides = [1, 1]} : vector<32x128xf32> to vector<16x128xf32>
    %cst_84 = arith.constant 0.175972864 : f32
    %107 = vector.broadcast %cst_84 : f32 to vector<16x128xf32>
    %108 = arith.mulf %107, %106 : vector<16x128xf32>
    %cst_85 = arith.constant 0.380797088 : f32
    %109 = vector.broadcast %cst_85 : f32 to vector<16x128xf32>
    %110 = arith.addf %109, %108 : vector<16x128xf32>
    %111 = arith.mulf %105, %110 : vector<16x128xf32>
    %cst_86 = arith.constant dense<0.000000e+00> : vector<32x128xf32>
    %112 = tpu.matmul %45, %111, %cst_86 {dimension_numbers = #tpu.dot_dimension_numbers<[1], [0], [0], [1], [0, 0, 1, 1], [], []>} : vector<32x16xf32>, vector<16x128xf32>, vector<32x128xf32> -> vector<32x128xf32>
    %113 = vector.broadcast %47 : vector<32x1xf32> to vector<32x128xf32>
    %114 = arith.addf %112, %113 : vector<32x128xf32>
    %115 = vector.extract_strided_slice %114 {offsets = [0, 0], sizes = [16, 128], strides = [1, 1]} : vector<32x128xf32> to vector<16x128xf32>
    %c1_87 = arith.constant 1 : index
    %c0_88 = arith.constant 0 : index
    %c0_89 = arith.constant 0 : index
    %c0_90 = arith.constant 0 : index
    %116 = vector.load %arg9[%c1_87, %c0_88, %c0_89, %c0_90] : memref<4x1x16x128xf32, #tpu.memory_space<vmem>>, vector<1x1x16x128xf32>
    %117 = vector.shape_cast %116 : vector<1x1x16x128xf32> to vector<16x128xf32>
    %118 = vector.shape_cast %115 : vector<16x128xf32> to vector<1x1x16x128xf32>
    tpu.vector_store %arg9[%c1_87, %c0_88, %c0_89, %c0_90], %118 {strides = array<i32>} : memref<4x1x16x128xf32, #tpu.memory_space<vmem>>, vector<1x1x16x128xf32>,
    %c1_91 = arith.constant 1 : index
    %c0_92 = arith.constant 0 : index
    %c0_93 = arith.constant 0 : index
    %c0_94 = arith.constant 0 : index
    %119 = vector.load %arg2[%c1_91, %c0_92, %c0_93, %c0_94] : memref<4x1x16x128xf32, #tpu.memory_space<vmem>>, vector<1x1x16x128xf32>
    %120 = vector.shape_cast %119 : vector<1x1x16x128xf32> to vector<16x128xf32>
    %121 = vector.extract_strided_slice %114 {offsets = [16, 0], sizes = [16, 128], strides = [1, 1]} : vector<32x128xf32> to vector<16x128xf32>
    %122 = arith.addf %120, %121 : vector<16x128xf32>
    %c1_95 = arith.constant 1 : index
    %c0_96 = arith.constant 0 : index
    %c0_97 = arith.constant 0 : index
    %c0_98 = arith.constant 0 : index
    %123 = vector.load %arg8[%c1_95, %c0_96, %c0_97, %c0_98] : memref<4x1x16x128xf32, #tpu.memory_space<vmem>>, vector<1x1x16x128xf32>
    %124 = vector.shape_cast %123 : vector<1x1x16x128xf32> to vector<16x128xf32>
    %125 = vector.shape_cast %122 : vector<16x128xf32> to vector<1x1x16x128xf32>
    tpu.vector_store %arg8[%c1_95, %c0_96, %c0_97, %c0_98], %125 {strides = array<i32>} : memref<4x1x16x128xf32, #tpu.memory_space<vmem>>, vector<1x1x16x128xf32>,
    %c0_99 = arith.constant 0 : index
    %c256_100 = arith.constant 256 : index
    %126 = vector.load %arg10[%c0_99, %c256_100] : memref<48x512xf32, #tpu.memory_space<vmem>>, vector<48x128xf32>
    %cst_101 = arith.constant dense<0.000000e+00> : vector<32x128xf32>
    %127 = tpu.matmul %44, %126, %cst_101 {dimension_numbers = #tpu.dot_dimension_numbers<[1], [0], [0], [1], [0, 0, 1, 1], [], []>} : vector<32x48xf32>, vector<48x128xf32>, vector<32x128xf32> -> vector<32x128xf32>
    %128 = vector.broadcast %46 : vector<32x1xf32> to vector<32x128xf32>
    %129 = arith.addf %127, %128 : vector<32x128xf32>
    %c0_102 = arith.constant 0 : index
    %c0_103 = arith.constant 0 : index
    %130 = vector.load %arg11[%c0_102, %c0_103] : memref<32x128xf32, #tpu.memory_space<vmem>>, vector<32x128xf32>
    %cst_104 = arith.constant 0.166666672 : f32
    %131 = vector.broadcast %cst_104 : f32 to vector<32x128xf32>
    %132 = arith.mulf %130, %131 : vector<32x128xf32>
    %cst_105 = arith.constant 0.833333313 : f32
    %133 = vector.broadcast %cst_105 : f32 to vector<32x128xf32>
    %134 = arith.mulf %129, %133 : vector<32x128xf32>
    %135 = arith.addf %132, %134 : vector<32x128xf32>
    %cst_106 = arith.constant 5.000000e-01 : f32
    %136 = vector.broadcast %cst_106 : f32 to vector<32x128xf32>
    %137 = arith.cmpf oge, %135, %136 : vector<32x128xf32>
    %cst_107 = arith.constant 0.000000e+00 : f32
    %138 = vector.broadcast %cst_107 : f32 to vector<32x128xf32>
    %139 = arith.select %137, %138, %135 : vector<32x128xi1>, vector<32x128xf32>
    %c0_108 = arith.constant 0 : index
    %c0_109 = arith.constant 0 : index
    %140 = vector.load %arg11[%c0_108, %c0_109] : memref<32x128xf32, #tpu.memory_space<vmem>>, vector<32x128xf32>
    tpu.vector_store %arg11[%c0_108, %c0_109], %139 {strides = array<i32>} : memref<32x128xf32, #tpu.memory_space<vmem>>, vector<32x128xf32>,
    %141 = arith.extui %137 : vector<32x128xi1> to vector<32x128xi32>
    %142 = arith.sitofp %141 : vector<32x128xi32> to vector<32x128xf32>
    %143 = vector.extract_strided_slice %142 {offsets = [16, 0], sizes = [16, 128], strides = [1, 1]} : vector<32x128xf32> to vector<16x128xf32>
    %144 = vector.extract_strided_slice %142 {offsets = [0, 0], sizes = [16, 128], strides = [1, 1]} : vector<32x128xf32> to vector<16x128xf32>
    %cst_110 = arith.constant 0.175972864 : f32
    %145 = vector.broadcast %cst_110 : f32 to vector<16x128xf32>
    %146 = arith.mulf %145, %144 : vector<16x128xf32>
    %cst_111 = arith.constant 0.380797088 : f32
    %147 = vector.broadcast %cst_111 : f32 to vector<16x128xf32>
    %148 = arith.addf %147, %146 : vector<16x128xf32>
    %149 = arith.mulf %143, %148 : vector<16x128xf32>
    %cst_112 = arith.constant dense<0.000000e+00> : vector<32x128xf32>
    %150 = tpu.matmul %45, %149, %cst_112 {dimension_numbers = #tpu.dot_dimension_numbers<[1], [0], [0], [1], [0, 0, 1, 1], [], []>} : vector<32x16xf32>, vector<16x128xf32>, vector<32x128xf32> -> vector<32x128xf32>
    %151 = vector.broadcast %47 : vector<32x1xf32> to vector<32x128xf32>
    %152 = arith.addf %150, %151 : vector<32x128xf32>
    %153 = vector.extract_strided_slice %152 {offsets = [0, 0], sizes = [16, 128], strides = [1, 1]} : vector<32x128xf32> to vector<16x128xf32>
    %c2_113 = arith.constant 2 : index
    %c0_114 = arith.constant 0 : index
    %c0_115 = arith.constant 0 : index
    %c0_116 = arith.constant 0 : index
    %154 = vector.load %arg9[%c2_113, %c0_114, %c0_115, %c0_116] : memref<4x1x16x128xf32, #tpu.memory_space<vmem>>, vector<1x1x16x128xf32>
    %155 = vector.shape_cast %154 : vector<1x1x16x128xf32> to vector<16x128xf32>
    %156 = vector.shape_cast %153 : vector<16x128xf32> to vector<1x1x16x128xf32>
    tpu.vector_store %arg9[%c2_113, %c0_114, %c0_115, %c0_116], %156 {strides = array<i32>} : memref<4x1x16x128xf32, #tpu.memory_space<vmem>>, vector<1x1x16x128xf32>,
    %c2_117 = arith.constant 2 : index
    %c0_118 = arith.constant 0 : index
    %c0_119 = arith.constant 0 : index
    %c0_120 = arith.constant 0 : index
    %157 = vector.load %arg2[%c2_117, %c0_118, %c0_119, %c0_120] : memref<4x1x16x128xf32, #tpu.memory_space<vmem>>, vector<1x1x16x128xf32>
    %158 = vector.shape_cast %157 : vector<1x1x16x128xf32> to vector<16x128xf32>
    %159 = vector.extract_strided_slice %152 {offsets = [16, 0], sizes = [16, 128], strides = [1, 1]} : vector<32x128xf32> to vector<16x128xf32>
    %160 = arith.addf %158, %159 : vector<16x128xf32>
    %c2_121 = arith.constant 2 : index
    %c0_122 = arith.constant 0 : index
    %c0_123 = arith.constant 0 : index
    %c0_124 = arith.constant 0 : index
    %161 = vector.load %arg8[%c2_121, %c0_122, %c0_123, %c0_124] : memref<4x1x16x128xf32, #tpu.memory_space<vmem>>, vector<1x1x16x128xf32>
    %162 = vector.shape_cast %161 : vector<1x1x16x128xf32> to vector<16x128xf32>
    %163 = vector.shape_cast %160 : vector<16x128xf32> to vector<1x1x16x128xf32>
    tpu.vector_store %arg8[%c2_121, %c0_122, %c0_123, %c0_124], %163 {strides = array<i32>} : memref<4x1x16x128xf32, #tpu.memory_space<vmem>>, vector<1x1x16x128xf32>,
    %c0_125 = arith.constant 0 : index
    %c384_126 = arith.constant 384 : index
    %164 = vector.load %arg10[%c0_125, %c384_126] : memref<48x512xf32, #tpu.memory_space<vmem>>, vector<48x128xf32>
    %cst_127 = arith.constant dense<0.000000e+00> : vector<32x128xf32>
    %165 = tpu.matmul %44, %164, %cst_127 {dimension_numbers = #tpu.dot_dimension_numbers<[1], [0], [0], [1], [0, 0, 1, 1], [], []>} : vector<32x48xf32>, vector<48x128xf32>, vector<32x128xf32> -> vector<32x128xf32>
    %166 = vector.broadcast %46 : vector<32x1xf32> to vector<32x128xf32>
    %167 = arith.addf %165, %166 : vector<32x128xf32>
    %c0_128 = arith.constant 0 : index
    %c0_129 = arith.constant 0 : index
    %168 = vector.load %arg11[%c0_128, %c0_129] : memref<32x128xf32, #tpu.memory_space<vmem>>, vector<32x128xf32>
    %cst_130 = arith.constant 0.166666672 : f32
    %169 = vector.broadcast %cst_130 : f32 to vector<32x128xf32>
    %170 = arith.mulf %168, %169 : vector<32x128xf32>
    %cst_131 = arith.constant 0.833333313 : f32
    %171 = vector.broadcast %cst_131 : f32 to vector<32x128xf32>
    %172 = arith.mulf %167, %171 : vector<32x128xf32>
    %173 = arith.addf %170, %172 : vector<32x128xf32>
    %cst_132 = arith.constant 5.000000e-01 : f32
    %174 = vector.broadcast %cst_132 : f32 to vector<32x128xf32>
    %175 = arith.cmpf oge, %173, %174 : vector<32x128xf32>
    %cst_133 = arith.constant 0.000000e+00 : f32
    %176 = vector.broadcast %cst_133 : f32 to vector<32x128xf32>
    %177 = arith.select %175, %176, %173 : vector<32x128xi1>, vector<32x128xf32>
    %c0_134 = arith.constant 0 : index
    %c0_135 = arith.constant 0 : index
    %178 = vector.load %arg11[%c0_134, %c0_135] : memref<32x128xf32, #tpu.memory_space<vmem>>, vector<32x128xf32>
    tpu.vector_store %arg11[%c0_134, %c0_135], %177 {strides = array<i32>} : memref<32x128xf32, #tpu.memory_space<vmem>>, vector<32x128xf32>,
    %179 = arith.extui %175 : vector<32x128xi1> to vector<32x128xi32>
    %180 = arith.sitofp %179 : vector<32x128xi32> to vector<32x128xf32>
    %181 = vector.extract_strided_slice %180 {offsets = [16, 0], sizes = [16, 128], strides = [1, 1]} : vector<32x128xf32> to vector<16x128xf32>
    %182 = vector.extract_strided_slice %180 {offsets = [0, 0], sizes = [16, 128], strides = [1, 1]} : vector<32x128xf32> to vector<16x128xf32>
    %cst_136 = arith.constant 0.175972864 : f32
    %183 = vector.broadcast %cst_136 : f32 to vector<16x128xf32>
    %184 = arith.mulf %183, %182 : vector<16x128xf32>
    %cst_137 = arith.constant 0.380797088 : f32
    %185 = vector.broadcast %cst_137 : f32 to vector<16x128xf32>
    %186 = arith.addf %185, %184 : vector<16x128xf32>
    %187 = arith.mulf %181, %186 : vector<16x128xf32>
    %cst_138 = arith.constant dense<0.000000e+00> : vector<32x128xf32>
    %188 = tpu.matmul %45, %187, %cst_138 {dimension_numbers = #tpu.dot_dimension_numbers<[1], [0], [0], [1], [0, 0, 1, 1], [], []>} : vector<32x16xf32>, vector<16x128xf32>, vector<32x128xf32> -> vector<32x128xf32>
    %189 = vector.broadcast %47 : vector<32x1xf32> to vector<32x128xf32>
    %190 = arith.addf %188, %189 : vector<32x128xf32>
    %191 = vector.extract_strided_slice %190 {offsets = [0, 0], sizes = [16, 128], strides = [1, 1]} : vector<32x128xf32> to vector<16x128xf32>
    %c3_139 = arith.constant 3 : index
    %c0_140 = arith.constant 0 : index
    %c0_141 = arith.constant 0 : index
    %c0_142 = arith.constant 0 : index
    %192 = vector.load %arg9[%c3_139, %c0_140, %c0_141, %c0_142] : memref<4x1x16x128xf32, #tpu.memory_space<vmem>>, vector<1x1x16x128xf32>
    %193 = vector.shape_cast %192 : vector<1x1x16x128xf32> to vector<16x128xf32>
    %194 = vector.shape_cast %191 : vector<16x128xf32> to vector<1x1x16x128xf32>
    tpu.vector_store %arg9[%c3_139, %c0_140, %c0_141, %c0_142], %194 {strides = array<i32>} : memref<4x1x16x128xf32, #tpu.memory_space<vmem>>, vector<1x1x16x128xf32>,
    %c3_143 = arith.constant 3 : index
    %c0_144 = arith.constant 0 : index
    %c0_145 = arith.constant 0 : index
    %c0_146 = arith.constant 0 : index
    %195 = vector.load %arg2[%c3_143, %c0_144, %c0_145, %c0_146] : memref<4x1x16x128xf32, #tpu.memory_space<vmem>>, vector<1x1x16x128xf32>
    %196 = vector.shape_cast %195 : vector<1x1x16x128xf32> to vector<16x128xf32>
    %197 = vector.extract_strided_slice %190 {offsets = [16, 0], sizes = [16, 128], strides = [1, 1]} : vector<32x128xf32> to vector<16x128xf32>
    %198 = arith.addf %196, %197 : vector<16x128xf32>
    %c3_147 = arith.constant 3 : index
    %c0_148 = arith.constant 0 : index
    %c0_149 = arith.constant 0 : index
    %c0_150 = arith.constant 0 : index
    %199 = vector.load %arg8[%c3_147, %c0_148, %c0_149, %c0_150] : memref<4x1x16x128xf32, #tpu.memory_space<vmem>>, vector<1x1x16x128xf32>
    %200 = vector.shape_cast %199 : vector<1x1x16x128xf32> to vector<16x128xf32>
    %201 = vector.shape_cast %198 : vector<16x128xf32> to vector<1x1x16x128xf32>
    tpu.vector_store %arg8[%c3_147, %c0_148, %c0_149, %c0_150], %201 {strides = array<i32>} : memref<4x1x16x128xf32, #tpu.memory_space<vmem>>, vector<1x1x16x128xf32>,
    return
  }
  func.func @transform_0(%arg0: i32, %arg1: i32) -> (i32, i32, i32, i32) {
    %c0_i32 = arith.constant 0 : i32
    %c0_i32_0 = arith.constant 0 : i32
    %c0_i32_1 = arith.constant 0 : i32
    return %c0_i32, %arg0, %c0_i32_0, %arg1 : i32, i32, i32, i32
  }
  func.func @transform_1(%arg0: i32, %arg1: i32) -> (i32, i32, i32, i32) {
    %c0_i32 = arith.constant 0 : i32
    %c0_i32_0 = arith.constant 0 : i32
    %c0_i32_1 = arith.constant 0 : i32
    return %arg0, %arg1, %c0_i32, %c0_i32_0 : i32, i32, i32, i32
  }
  func.func @transform_2(%arg0: i32, %arg1: i32) -> (i32, i32) {
    %c0_i32 = arith.constant 0 : i32
    %c0_i32_0 = arith.constant 0 : i32
    %c0_i32_1 = arith.constant 0 : i32
    return %c0_i32, %c0_i32_0 : i32, i32
  }
  func.func @transform_3(%arg0: i32, %arg1: i32) -> (i32, i32) {
    %c0_i32 = arith.constant 0 : i32
    %c0_i32_0 = arith.constant 0 : i32
    %c0_i32_1 = arith.constant 0 : i32
    return %c0_i32, %c0_i32_0 : i32, i32
  }
  func.func @transform_4(%arg0: i32, %arg1: i32) -> (i32, i32) {
    %c0_i32 = arith.constant 0 : i32
    %c0_i32_0 = arith.constant 0 : i32
    %c0_i32_1 = arith.constant 0 : i32
    return %c0_i32, %c0_i32_0 : i32, i32
  }
  func.func @transform_5(%arg0: i32, %arg1: i32) -> (i32, i32) {
    %c0_i32 = arith.constant 0 : i32
    %c0_i32_0 = arith.constant 0 : i32
    %c0_i32_1 = arith.constant 0 : i32
    return %c0_i32, %c0_i32_0 : i32, i32
  }
  func.func @transform_6(%arg0: i32, %arg1: i32) -> (i32, i32, i32, i32) {
    %c0_i32 = arith.constant 0 : i32
    %c0_i32_0 = arith.constant 0 : i32
    %c0_i32_1 = arith.constant 0 : i32
    return %c0_i32, %arg0, %c0_i32_0, %arg1 : i32, i32, i32, i32
  }
  func.func @transform_7(%arg0: i32, %arg1: i32) -> (i32, i32, i32, i32) {
    %c0_i32 = arith.constant 0 : i32
    %c0_i32_0 = arith.constant 0 : i32
    %c0_i32_1 = arith.constant 0 : i32
    return %c0_i32, %arg0, %c0_i32_0, %arg1 : i32, i32, i32, i32
  }
}

</mosaic_0001>

<bundles_post_ra>
// kernel: tpu_custom_call.1
= control target key start
LH: loop header
LB: loop body
LE: loop exit
PB: predicated region body
PF: predicated region fallthrough
CT: control target
= control target key end

     0   :  { %13 = vsyncpa [#allocation5], 0  ;;  %s3001_s0 = inlined_call_operand.hbm [shape: f32[4,2,16,256], index: 0, kind: input, shape index: {}]   ;;  %s3002_s1 = inlined_call_operand.vmem [shape: f32[2,2,16,9], index: 1, kind: input, shape index: {}]   ;;  %s3003_s2 = inlined_call_operand.vmem [shape: f32[32,48], index: 2, kind: input, shape index: {}]   ;;  %s3004_s3 = inlined_call_operand.vmem [shape: f32[32,1], index: 3, kind: input, shape index: {}]   ;;  %s3005_s4 = inlined_call_operand.vmem [shape: f32[32,16], index: 4, kind: input, shape index: {}]   ;;  %s3006_s5 = inlined_call_operand.vmem [shape: f32[32,1], index: 5, kind: input, shape index: {}]   ;;  %s3007_s6 = inlined_call_operand.hbm [shape: f32[4,2,16,256], index: 6, kind: output, shape index: {0}]   ;;  %s3008_s7 = inlined_call_operand.hbm [shape: f32[4,2,16,256], index: 7, kind: output, shape index: {1}]  }
   0x1   :  { %15 = vsyncpa [#allocation5 + $0x1], 0 }
   0x2   :  { %16 = vsyncpa [#allocation6], 0 }
   0x3   :  { %18 = vsyncpa [#allocation6 + $0x1], 0 }
   0x4   :  { %19 = vsyncpa [#allocation9], 0 }
   0x5   :  { %21 = vsyncpa [#allocation9 + $0x1], 0  ;;  %s2409_s24 = smov 0   ;;  %s2411_s25 = smov 0  }
   0x6   :  { %s2413_s26 = smov 0   ;;  %s2415_s27 = smov 0  }
   0x7   :  { %s2417_s28 = smov 0   ;;  %s2419_s29 = smov 0  }
   0x8   :  { %s2421_s30 = smov 0   ;;  %s2423_s8 = smov 0  }
   0x9 LB: > { %3014 = sst [smem:[#allocation20_spill]] %s2308_s24  ;;  %s1795_s9 = sadd.s32 4294967295, %s2336_s8   ;;  %s2336_s8 = sphi %s2423_s8, %s27_s8   ;;  %s2332_s30 = sphi %s2421_s30, %s3035_s30   ;;  %s2328_s29 = sphi %s2419_s29, %s3034_s29   ;;  %s2324_s28 = sphi %s2417_s28, %s3033_s28   ;;  %s2320_s27 = sphi %s2415_s27, %s3032_s27   ;;  %s2316_s26 = sphi %s2413_s26, %s3027_s26   ;;  %s2312_s25 = sphi %s2411_s25, %s3031_s25   ;;  %s2308_s24 = sphi %s2409_s24, %s3030_s24  }
   0xa   : > { %3015 = sst [smem:[#allocation21_spill]] %s2316_s26  ;;  %s1796_s10 = sadd.s32 4294967294, %s2336_s8  }
   0xb   : > { %s36_s11 = sadd.s32 1, %s2328_s29  ;;  %s39_s12 = sadd.s32 1, %s2332_s30 }
   0xc   : > { %p37_p0 = scmp.ge.s32.totalorder %s36_s11, 2  ;;  %p55_p1 = scmp.ne.s32.totalorder %s2316_s26, %s2312_s25 }
   0xd   : > { %p56_p2 = scmp.eq.s32.totalorder %s2336_s8, 0  ;;  %p61_p5 = scmp.ne.s32.totalorder %s2312_s25, %s2308_s24 }
   0xe   : > { %s3037_s11 = smov (%p37_p0, %s36_s11), 0  ;;  %s3039_s12 = smov (!%p37_p0, %s39_s12), %s2332_s30 }
   0xf   : > { %3016 = sst [smem:[#allocation22_spill]] %s3037_s11  ;;  %s44_s13 = ssub.s32 %s2328_s29, %s3037_s11 }
  0x10   : > { %p2461_p3 = por %p56_p2, %p55_p1  ;;  %p41_p4 = scmp.ge.s32.totalorder %s3039_s12, 2 }
  0x11   : > { %p62_p6 = scmp.eq.s32.totalorder %s1795_s9, 0  ;;  %p199_p7 = scmp.eq.s32.totalorder %s1795_s9, 3 }
  0x12   : > { %s3041_s12 = smov (%p41_p4, %s3039_s12), 0  ;;  %p205_p10 = scmp.eq.s32.totalorder %s1796_s10, 3 }
  0x13   : > { %3018 = sst [smem:[#allocation23_spill]] %s3041_s12  ;;  %p2469_p8 = por %p62_p6, %p61_p5 }
  0x14   : > { %p2473_p9 = por %p199_p7, %p55_p1  ;;  %s43_s17 = ssub.s32 %s2332_s30, %s3041_s12 }
  0x15   : > { %s45_s18 = sor.u32 %s44_s13, %s43_s17  ;;  %s48_s19 = sadd.s32 1, %s2316_s26 }
  0x16   : > { %p46_p11 = scmp.eq.s32.totalorder %s45_s18, 0  ;;  %p2480_p12 = por %p205_p10, %p61_p5 }
  0x17   : > { %p1798_p13 = scmp.ge.s32.totalorder %s2336_s8, 4 }
  0x18   : > { %s3021_s20 = scalar_select %p2480_p12, 1, 0 }
  0x19   : > { %s2485_s21 = scalar_select %p46_p11, %s2316_s26, %s48_s19  }
  0x1a   : > { %3022 = sst [smem:[#allocation24_spill]] %s3021_s20  ;;  %261 = sbr.rel (%p1798_p13) target bundleno = 48 (0x30), region = 32 }
  0x1b   : > { %3023 = sst [smem:[#allocation25_spill]] %s2485_s21 }
  0x21   : > { %s265_s22 = sand.u32 1, %s2316_s26   ;;  %s1800_s23 = sshll.u32 %s2332_s30, 2 }
  0x22   : > { %s1799_s9 = sshll.u32 %s265_s22, 6  ;;  %s274_s10 = sadd.s32 %s2328_s29, %s1800_s23 }
  0x23   : > { %s1801_s13 = sshll.u32 %s274_s10, 7  ;;  %s269_s12 = scalar_lea.vmem [#allocation4], %s1799_s9 }
  0x24   : > { %s276_s19 = scalar_lea.hbm %s3001_s0, %s1801_s13  ;;  %s289_s11 = sshll.u32 %s269_s12, 4  ;;  %s290_s11 = int_to_ptr.vmem [resolvable:$true] %s289_s11 }
  0x25   : > { %s2131_s21 = scalar_select %p2461_p3, [#allocation0], [#allocation16] }
  0x26   : > { %s2338_s24 = smov 1024   ;;  %s2339_s26 = smov 256  }
  0x27   : > { %s281_s20 = sld [smem:[%s2131_s21]]   ;;  %s2340_s23 = smov 2  }
  0x28   : > { %2132 = sst [smem:[#allocation11]] (%p2461_p3), %s2338_s24  ;;  %s2341_s10 = smov 128  }
  0x29   : > { %2133 = sst [smem:[#allocation11 + $0x1]] (%p2461_p3), %s2339_s26  ;;  %s2342_s12 = smov 8  }
  0x2a   : > { %2134 = sst [smem:[#allocation11 + $0x2]] (%p2461_p3), %s2340_s23  ;;  %s266_s13 = scalar_lea.sflag [#allocation5], %s265_s22 }
  0x2b   : > { %2135 = sst [smem:[#allocation11 + $0x3]] (%p2461_p3), %s2339_s26  ;;  %s2343_s17 = smov [#allocation10]  }
  0x2c   : > { %2136 = sst [smem:[#allocation11 + $0x4]] (%p2461_p3), %s2341_s10 }
  0x2d   : > { %2137 = sst [smem:[#allocation11 + $0x5]] (%p2461_p3), %s2342_s12  ;;  %s1802_s21 = sshll.u32 %s281_s20, 26 }
  0x2e   : > { %s1803_s9 = sadd.s32 134217728, %s1802_s21 }
  0x2f   : > { %2138 = dma.general (%p2461_p3), %s276_s19, 1024, %s290_s11, %s266_s13, %s2343_s17, [#allocation11], %s1803_s9, 0  }
  0x30 PF: > { %p1804_p0 = scmp.ge.s32.totalorder %s2336_s8, 1  ;;  %p322_p1 = scmp.lt.s32.totalorder %s2336_s8, 5 }
  0x32   : > { %p323_p2 = pnand %p1804_p0, %p322_p1 }
  0x33   : > { %s2513_s24 = sand.u32 (!%p323_p2), 1, %s2312_s25  }
  0x34   : > { %326 = sbr.rel (%p323_p2) target bundleno = 1323 (0x52b), region = 44  ;;  %s2516_s26 = sshll.u32 (!%p323_p2), %s2513_s24, 6 }
  0x35   : > { %s329_s20 = scalar_lea.sflag (!%p323_p2), [#allocation5], %s2513_s24  ;;  %s2520_s22 = scalar_lea.vmem (!%p323_p2), [#allocation4], %s2516_s26 }
  0x3b   : > { %2295 = dma.done.wait (%p2469_p8), %s329_s20, 1024  }
  0x3c   : > { %2297 = vsyncadd (%p2469_p8), %s329_s20, 4294966272  ;;  %p377_p3 = scmp.lt.s32.totalorder %s2324_s28, 1  ;;  %p379_p4 = scmp.lt.s32.totalorder %s2320_s27, 1  ;;  %v2344_v0 = vmov 8   ;;  %v2345_v3 = vmov 0   ;;  %v2540_v4 = vld [vmem:[%s2520_s22] sm:$0xff]  ;;  %v449_v35 = vlaneseq }
  0x3d   : > { %2259 = vset.pattern.permute.xlu0 %v2344_v0  ;;  %2261 = vset.pattern.permute.xlu1 %v2345_v3  ;;  %v2543_v5 = vld [vmem:[%s2520_s22 + $0x10] sm:$0xff]  ;;  %v2546_v6 = vld [vmem:[%s2520_s22 + $0x20] sm:$0xff]  ;;  %v2556_v13 = vld [vmem:[%s2520_s22 + $0x8] sm:$0xff]  ;;  %s2346_s9 = smov 1   ;;  %s2347_s13 = smov 127   ;;  %vm607_vm0 = vcmask 392192  }
  0x3e   : > { %s378_s11 = scalar_select %p377_p3, %s2324_s28, 1  ;;  %v2549_v7 = vld [vmem:[%s2520_s22 + $0x30] sm:$0xff]  ;;  %v2559_v14 = vld [vmem:[%s2520_s22 + $0x18] sm:$0xff]  ;;  %v2562_v15 = vld [vmem:[%s2520_s22 + $0x28] sm:$0xff]  ;;  %v2642_v36 = vand.u32 127, %v449_v35  ;;  %vm501_vm2 = vcmask 7168  }
  0x3f   : > { %s380_s14 = scalar_select %p379_p4, %s2320_s27, 1  ;;  %v2565_v16 = vld [vmem:[%s2520_s22 + $0x38] sm:$0xff]  ;;  %v569_v26 = vld [vmem:[%s3004_s3] sm:$0xff]  ;;  %v570_v29 = vld [vmem:[%s3004_s3 + $0x8] sm:$0xff]  ;;  %vm510_vm4 = vcmask 1048568   ;;  %vm767_vm5 = vcmask 130048  }
  0x40   : > { %s1809_s18 = sshll.u32 %s378_s11, 2  ;;  %s2348_s17 = smov 123   ;;  %v572_v27 = vld [vmem:[%s3004_s3 + $0x18] sm:$0xff]  ;;  %v2597_v28 = vld [vmem:[%s3003_s2] sm:$0xff]  ;;  %v571_v30 = vld [vmem:[%s3004_s3 + $0x10] sm:$0xff]  ;;  %vm451_vm1 = vcmp.lt.s32.totalorder %v2642_v36, 1 }
  0x41   : > { %s1808_s19 = sshll.u32 %s380_s14, 1  ;;  %1967 = vmatprep.mubr.msk.f32.mxu0 %vm607_vm0, %v2597_v28  ;;  %s2351_s20 = smov 121   ;;  %v576_v31 = vld [vmem:[%s3006_s5 + $0x18] sm:$0xff]  ;;  %v575_v32 = vld [vmem:[%s3006_s5 + $0x10] sm:$0xff]  ;;  %v574_v33 = vld [vmem:[%s3006_s5 + $0x8] sm:$0xff]  ;;  %vm484_vm3 = vcmp.lt.s32.totalorder %v2642_v36, 127 }
  0x42   : > { %s383_s23 = sadd.s32 %s1809_s18, %s1808_s19  ;;  %s2352_s22 = smov 125   ;;  %v573_v34 = vld [vmem:[%s3006_s5] sm:$0xff]  ;;  %v2676_v58 = vld [vmem:[%s3003_s2 + $0x8] sm:$0xff]  ;;  %v2683_v60 = vld [vmem:[%s3003_s2 + $0x10] sm:$0xff] }
  0x43   : > { %s1810_s10 = sshll.u32 %s383_s23, 3  ;;  %s2353_s11 = smov 120   ;;  %v2692_v61 = vld [vmem:[%s3003_s2 + $0x18] sm:$0xff]  ;;  %v2742_v36 = vld [vmem:[%s3005_s4] sm:$0xff] }
  0x44   : > { %s385_s21 = scalar_lea.vmem %s3002_s1, %s1810_s10  ;;  %1977 = vmatprep.mubr.msk.f32.mxu1 %vm767_vm5, %v2742_v36  ;;  %s2818_s12 = scalar_lea.vmem [#allocation8], %s2516_s26 }
  0x45   : > { %v2533_v1 = vld [vmem:[%s385_s21] sm:$0xff]  ;;  %v2536_v2 = vld [vmem:[%s385_s21 + $0x8] sm:$0xff]  ;;  %s2349_s21 = smov 122  }
  0x46   : > { %392 = vperm.xlu0 %2259, %v2533_v1  }
  0x4a   : > { %397 = vperm.xlu0 %2259, %v2536_v2  }
  0x4e   : > { %2260 = vset.pattern.permute.xlu0 %v2345_v3 }
  0xc5   : > { %v393_v8 = vpop.permute.xlu0 %392 }
  0xc6   : > { %v400_v9 = vadd.f32 %v393_v8, %v2540_v4  ;;  %v407_v10 = vadd.f32 %v2543_v5, %v393_v8  ;;  %v414_v11 = vadd.f32 %v2546_v6, %v393_v8  ;;  %v421_v12 = vadd.f32 %v2549_v7, %v393_v8 }
  0xc8   : > { %433 = vrot.lane.b32.xlu1 %v400_v9, %s2346_s9  ;;  %445 = vrot.lane.b32.xlu0 %v421_v12, %s2346_s9 }
  0xc9   : > { %v398_v17 = vpop.permute.xlu0 %397 }
  0xca   : > { %v401_v18 = vadd.f32 %v398_v17, %v2556_v13  ;;  %v408_v19 = vadd.f32 %v2559_v14, %v398_v17  ;;  %v415_v20 = vadd.f32 %v2562_v15, %v398_v17  ;;  %v422_v21 = vadd.f32 %v2565_v16, %v398_v17 }
  0xcc   : > { %468 = vrot.lane.b32.xlu0 %v400_v9, %s2347_s13  ;;  %435 = vrot.lane.b32.xlu1 %v401_v18, %s2346_s9  ;;  %v2575_v22 = vpack.c.bf16 %v401_v18, %v400_v9  ;;  %v2577_v23 = vpack.c.bf16 %v408_v19, %v407_v10  ;;  %v2579_v24 = vpack.c.bf16 %v415_v20, %v414_v11 }
  0xcd   : > { %v2581_v25 = vpack.c.bf16 %v422_v21, %v421_v12 }
  0xd0   : > { %472 = vrot.lane.b32.xlu0 %v407_v10, %s2347_s13  ;;  %447 = vrot.lane.b32.xlu1 %v422_v21, %s2346_s9 }
  0xd4   : > { %504 = vrot.lane.b32.xlu0 %v2533_v1, %s2348_s17  ;;  %470 = vrot.lane.b32.xlu1 %v401_v18, %s2347_s13 }
  0xd8   : > { %589 = vperm.xlu0 %2260, %v569_v26   ;;  %474 = vrot.lane.b32.xlu1 %v408_v19, %s2347_s13 }
  0xdc   : > { %604 = vperm.xlu0 %2260, %v572_v27   ;;  %506 = vrot.lane.b32.xlu1 %v2536_v2, %s2348_s17  ;;  %s2350_s17 = smov 126  }
  0xe0   : > { %515 = vrot.lane.b32.xlu0 %v2536_v2, %s2347_s13  ;;  %594 = vperm.xlu1 %2261, %v570_v29  }
  0xe4   : > { %439 = vrot.lane.b32.xlu0 %v408_v19, %s2346_s9  ;;  %599 = vperm.xlu1 %2261, %v571_v30  }
  0xe8   : > { %523 = vrot.lane.b32.xlu0 %v2536_v2, %s2349_s21  ;;  %513 = vrot.lane.b32.xlu1 %v2533_v1, %s2347_s13 }
  0xec   : > { %478 = vrot.lane.b32.xlu0 %v415_v20, %s2347_s13  ;;  %437 = vrot.lane.b32.xlu1 %v407_v10, %s2346_s9 }
  0xf0   : > { %443 = vrot.lane.b32.xlu0 %v415_v20, %s2346_s9  ;;  %521 = vrot.lane.b32.xlu1 %v2533_v1, %s2349_s21  ;;  %s2827_s21 = scalar_lea.vmem [#allocation7], %s2516_s26  ;;  %s1558_s26 = scalar_lea.sflag [#allocation6], %s2513_s24 }
  0xf4   : > { %531 = vrot.lane.b32.xlu0 %v2536_v2, %s2350_s17  ;;  %476 = vrot.lane.b32.xlu1 %v414_v11, %s2347_s13 }
  0xf8   : > { %482 = vrot.lane.b32.xlu0 %v422_v21, %s2347_s13  ;;  %441 = vrot.lane.b32.xlu1 %v414_v11, %s2346_s9 }
  0xfc   : > { %529 = vrot.lane.b32.xlu1 %v2533_v1, %s2350_s17  ;;  %539 = vrot.lane.b32.xlu0 %v2536_v2, %s2351_s20  ;;  %s1563_s17 = scalar_lea.sflag [#allocation9], %s2513_s24 }
 0x100   : > { %480 = vrot.lane.b32.xlu1 %v421_v12, %s2347_s13  ;;  %547 = vrot.lane.b32.xlu0 %v2536_v2, %s2352_s22 }
 0x104   : > { %537 = vrot.lane.b32.xlu1 %v2533_v1, %s2351_s20  ;;  %555 = vrot.lane.b32.xlu0 %v2536_v2, %s2353_s11 }
 0x108   : > { %545 = vrot.lane.b32.xlu1 %v2533_v1, %s2352_s22  ;;  %764 = vperm.xlu0 %2260, %v576_v31  }
 0x10c   : > { %553 = vrot.lane.b32.xlu1 %v2533_v1, %s2353_s11  ;;  %754 = vperm.xlu0 %2260, %v574_v33  }
 0x110   : > { %759 = vperm.xlu1 %2261, %v575_v32  }
 0x114   : > { %749 = vperm.xlu1 %2261, %v573_v34  }
 0x13a   : > { %v434_v37 = vpop.permute.xlu1 %433  ;;  %v2645_v38 = vpop.permute.xlu0 %445 }
 0x13b   : > { %v458_v39 = vsel %vm451_vm1, %v2645_v38, %v434_v37 }
 0x13c   : > { %460 = vst [vmem:[#allocation2] sm:$0xff] %v458_v39 }
 0x13d   : > { %502 = vst.msk [vmem:[#allocation2] sm:$0xff] %vm501_vm2, %v2533_v1 }
 0x13e   : > { %v436_v40 = vpop.permute.xlu1 %435  ;;  %v2652_v41 = vpop.permute.xlu0 %468 }
 0x142   : > { %v448_v42 = vpop.permute.xlu1 %447  ;;  %v473_v43 = vpop.permute.xlu0 %472 }
 0x143   : > { %v459_v44 = vsel %vm451_vm1, %v448_v42, %v436_v40  ;;  %v489_v45 = vsel %vm484_vm3, %v2652_v41, %v473_v43 }
 0x144   : > { %464 = vst [vmem:[#allocation2 + $0x20] sm:$0xff] %v459_v44  ;;  %493 = vst [vmem:[#allocation2 + $0x80] sm:$0xff] %v489_v45  ;;  %v581_v49 = vld [vmem:[#allocation2] sm:$0xff] }
 0x145   : > { %503 = vst.msk [vmem:[#allocation2 + $0x20] sm:$0xff] %vm501_vm2, %v2536_v2 }
 0x146   : > { %v2662_v46 = vpop.permute.xlu1 %470  ;;  %v505_v47 = vpop.permute.xlu0 %504 }
 0x147   : > { %511 = vst.msk [vmem:[#allocation2 + $0x80] sm:$0xff] %vm510_vm4, %v505_v47 }
 0x14a   : > { %v475_v48 = vpop.permute.xlu1 %474 }
 0x14b   : > { %v490_v50 = vsel %vm484_vm3, %v2662_v46, %v475_v48 }
 0x14c   : > { %497 = vst [vmem:[#allocation2 + $0xa0] sm:$0xff] %v490_v50  ;;  %v582_v51 = vld [vmem:[#allocation2 + $0x20] sm:$0xff] }
 0x14d   : > { %v2067_v52 = vpack.c.bf16 %v582_v51, %v581_v49 }
 0x14e   : > { %v507_v53 = vpop.permute.xlu1 %506  ;;  %v585_v54 = vld [vmem:[#allocation2 + $0x80] sm:$0xff] }
 0x14f   : > { %512 = vst.msk [vmem:[#allocation2 + $0xa0] sm:$0xff] %vm510_vm4, %v507_v53  ;;  %2068 = vmatprep.subr.bf16.mxu0 %v2067_v52 }
 0x150   : > { %2070 = vmatpush3.bf16.msra.mxu0 %v2067_v52 }
 0x151   : > { %2072 = vmatprep.subr.bf16.mxu0 %v2575_v22 }
 0x154   : > { %2074 = vmatpush3.bf16.msra.mxu0 %v2575_v22 }
 0x156   : > { %v586_v55 = vld [vmem:[#allocation2 + $0xa0] sm:$0xff] }
 0x157   : > { %v2671_v56 = vpop.permute.xlu0 %589  ;;  %v2075_v57 = vpack.c.bf16 %v586_v55, %v585_v54  ;;  %v2354_v55 = vmov 0.0  }
 0x159   : > { %2076 = vmatprep.subr.bf16.mxu0 %v2075_v57 }
 0x15a   : > { %2078 = vmatpush3.bf16.msra.mxu0 %v2075_v57 }
 0x15b   : > { %v2678_v59 = vpop.permute.xlu0 %604 }
 0x15d   : > { %1968 = vmatmul.mubr.msk.f32.vlgmr.msra.gmra.mrb[0].mxu0 %vm607_vm0, %v2676_v58 }
 0x15e   : > { %1970 = vmatprep.mubr.msk.f32.mxu0 %vm607_vm0, %v2683_v60 }
 0x15f   : > { %v2694_v62 = vpop.permute.xlu1 %594  ;;  %v516_v63 = vpop.permute.xlu0 %515 }
 0x161   : > { %1971 = vmatmul.mubr.msk.f32.gmra.mrb[2].mxu0 %vm607_vm0, %v2692_v61 }
 0x162   : > { %2005 = vmatprep.mubr.msk.f32.mxu0 %vm767_vm5, %v2742_v36 }
 0x163   : > { %v2698_v0 = vpop.permute.xlu1 %599  ;;  %v440_v1 = vpop.permute.xlu0 %439 }
 0x164   : > { %v457_v2 = vsel %vm451_vm1, %v436_v40, %v440_v1 }
 0x165   : > { %465 = vst [vmem:[#allocation2 + $0x28] sm:$0xff] %v457_v2 }
 0x166   : > { %520 = vst.msk [vmem:[#allocation2 + $0x28] sm:$0xff] %vm501_vm2, %v516_v63 }
 0x167   : > { %v514_v3 = vpop.permute.xlu1 %513  ;;  %v524_v8 = vpop.permute.xlu0 %523 }
 0x16b   : > { %v438_v9 = vpop.permute.xlu1 %437  ;;  %v479_v10 = vpop.permute.xlu0 %478 }
 0x16c   : > { %v456_v11 = vsel %vm451_vm1, %v434_v37, %v438_v9  ;;  %v488_v12 = vsel %vm484_vm3, %v475_v48, %v479_v10 }
 0x16d   : > { %461 = vst [vmem:[#allocation2 + $0x8] sm:$0xff] %v456_v11  ;;  %498 = vst [vmem:[#allocation2 + $0xa8] sm:$0xff] %v488_v12 }
 0x16e   : > { %519 = vst.msk [vmem:[#allocation2 + $0x8] sm:$0xff] %vm501_vm2, %v514_v3 }
 0x16f   : > { %528 = vst.msk [vmem:[#allocation2 + $0xa8] sm:$0xff] %vm510_vm4, %v524_v8  ;;  %v522_v17 = vpop.permute.xlu1 %521  ;;  %v444_v18 = vpop.permute.xlu0 %443 }
 0x170   : > { %v453_v19 = vsel %vm451_vm1, %v444_v18, %v448_v42  ;;  %v455_v20 = vsel %vm451_vm1, %v440_v1, %v444_v18 }
 0x171   : > { %466 = vst [vmem:[#allocation2 + $0x30] sm:$0xff] %v455_v20  ;;  %467 = vst [vmem:[#allocation2 + $0x38] sm:$0xff] %v453_v19 }
 0x173   : > { %v477_v21 = vpop.permute.xlu1 %476  ;;  %v532_v22 = vpop.permute.xlu0 %531 }
 0x174   : > { %v487_v26 = vsel %vm484_vm3, %v473_v43, %v477_v21  ;;  %536 = vst.msk [vmem:[#allocation2 + $0x30] sm:$0xff] %vm501_vm2, %v532_v22 }
 0x175   : > { %494 = vst [vmem:[#allocation2 + $0x88] sm:$0xff] %v487_v26  ;;  %v873_v26 = vld [vmem:[#allocation2 + $0x8] sm:$0xff] }
 0x176   : > { %527 = vst.msk [vmem:[#allocation2 + $0x88] sm:$0xff] %vm510_vm4, %v522_v17 }
 0x177   : > { %v442_v27 = vpop.permute.xlu1 %441  ;;  %v483_v29 = vpop.permute.xlu0 %482 }
 0x178   : > { %v452_v30 = vsel %vm451_vm1, %v442_v27, %v2645_v38  ;;  %v454_v31 = vsel %vm451_vm1, %v438_v9, %v442_v27  ;;  %v486_v32 = vsel %vm484_vm3, %v479_v10, %v483_v29  ;;  %v492_v33 = vsel %vm484_vm3, %v483_v29, %v2662_v46  ;;  %v874_v27 = vld [vmem:[#allocation2 + $0x28] sm:$0xff] }
 0x179   : > { %462 = vst [vmem:[#allocation2 + $0x10] sm:$0xff] %v454_v31  ;;  %463 = vst [vmem:[#allocation2 + $0x18] sm:$0xff] %v452_v30  ;;  %v2083_v30 = vpack.c.bf16 %v874_v27, %v873_v26  ;;  %v2767_v31 = vld [vmem:[%s3005_s4 + $0x8] sm:$0xff] }
 0x17a   : > { %499 = vst [vmem:[#allocation2 + $0xb0] sm:$0xff] %v486_v32  ;;  %500 = vst [vmem:[#allocation2 + $0xb8] sm:$0xff] %v492_v33  ;;  %v2772_v32 = vld [vmem:[%s3005_s4 + $0x10] sm:$0xff]  ;;  %v2781_v33 = vld [vmem:[%s3005_s4 + $0x18] sm:$0xff] }
 0x17b   : > { %v530_v34 = vpop.permute.xlu1 %529  ;;  %v540_v35 = vpop.permute.xlu0 %539 }
 0x17c   : > { %535 = vst.msk [vmem:[#allocation2 + $0x10] sm:$0xff] %vm501_vm2, %v530_v34 }
 0x17d   : > { %544 = vst.msk [vmem:[#allocation2 + $0xb0] sm:$0xff] %vm510_vm4, %v540_v35  ;;  %v877_v34 = vld [vmem:[#allocation2 + $0x88] sm:$0xff] }
 0x17e   : > { %v878_v35 = vld [vmem:[#allocation2 + $0xa8] sm:$0xff] }
 0x17f   : > { %v481_v37 = vpop.permute.xlu1 %480  ;;  %v548_v38 = vpop.permute.xlu0 %547 }
 0x180   : > { %v485_v39 = vsel %vm484_vm3, %v477_v21, %v481_v37  ;;  %v491_v40 = vsel %vm484_vm3, %v481_v37, %v2652_v41  ;;  %552 = vst.msk [vmem:[#allocation2 + $0x38] sm:$0xff] %vm501_vm2, %v548_v38  ;;  %v1102_v38 = vld [vmem:[#allocation2 + $0x30] sm:$0xff] }
 0x181   : > { %495 = vst [vmem:[#allocation2 + $0x90] sm:$0xff] %v485_v39  ;;  %496 = vst [vmem:[#allocation2 + $0x98] sm:$0xff] %v491_v40  ;;  %v2091_v39 = vpack.c.bf16 %v878_v35, %v877_v34 }
 0x183   : > { %v538_v42 = vpop.permute.xlu1 %537  ;;  %v556_v43 = vpop.permute.xlu0 %555  ;;  %v1101_v37 = vld [vmem:[#allocation2 + $0x10] sm:$0xff] }
 0x184   : > { %543 = vst.msk [vmem:[#allocation2 + $0x90] sm:$0xff] %vm510_vm4, %v538_v42  ;;  %560 = vst.msk [vmem:[#allocation2 + $0xb8] sm:$0xff] %vm510_vm4, %v556_v43  ;;  %v2099_v40 = vpack.c.bf16 %v1102_v38, %v1101_v37  ;;  %v1106_v43 = vld [vmem:[#allocation2 + $0xb0] sm:$0xff] }
 0x187   : > { %v546_v44 = vpop.permute.xlu1 %545 }
 0x188   : > { %551 = vst.msk [vmem:[#allocation2 + $0x18] sm:$0xff] %vm501_vm2, %v546_v44 }
 0x18b   : > { %v554_v45 = vpop.permute.xlu1 %553  ;;  %v1105_v42 = vld [vmem:[#allocation2 + $0x90] sm:$0xff] }
 0x18c   : > { %559 = vst.msk [vmem:[#allocation2 + $0x98] sm:$0xff] %vm510_vm4, %v554_v45  ;;  %v2107_v44 = vpack.c.bf16 %v1106_v43, %v1105_v42 }
 0x230   : > { %v1969_v41 = vpop.f32.mrb[0].mxu0 }
 0x231   : > { %v692_v46 = vadd.f32 %v1969_v41, %v2694_v62  ;;  %v686_v47 = vpop.f32.mrb[1].mxu0 }
 0x232   : > { %v687_v48 = vadd.f32 %v686_v47, %v2671_v56 }
 0x233   : > { %v714_v49 = vmul.f32 0.8333333, %v692_v46 }
 0x234   : > { %v713_v50 = vmul.f32 0.8333333, %v687_v48  ;;  %v1972_v51 = vpop.f32.mrb[2].mxu0 }
 0x235   : > { %vm722_vm6 = vcmp.ge.f32.partialorder %v714_v49, 0.5  ;;  %v702_v52 = vadd.f32 %v1972_v51, %v2678_v59  ;;  %v696_v53 = vpop.f32.mrb[3].mxu0 }
 0x236   : > { %v2751_v54 = vsel %vm722_vm6, 0.0, %v714_v49  ;;  %v1822_v57 = vsel %vm722_vm6, 1.0, %v2354_v55  ;;  %vm721_vm7 = vcmp.ge.f32.partialorder %v713_v50, 0.5  ;;  %v697_v63 = vadd.f32 %v696_v53, %v2698_v0 }
 0x237   : > { %v742_v1 = vmul.f32 0.17597286, %v1822_v57  ;;  %v2755_v2 = vsel %vm721_vm7, 0.0, %v713_v50  ;;  %v1821_v3 = vsel %vm721_vm7, 1.0, %v2354_v55  ;;  %v716_v9 = vmul.f32 0.8333333, %v702_v52 }
 0x238   : > { %v741_v8 = vmul.f32 0.17597286, %v1821_v3  ;;  %v715_v11 = vmul.f32 0.8333333, %v697_v63 }
 0x239   : > { %v744_v10 = vadd.f32 0.3807971, %v742_v1  ;;  %vm724_vm8 = vcmp.ge.f32.partialorder %v716_v9, 0.5 }
 0x23a   : > { %v743_v12 = vadd.f32 0.3807971, %v741_v8  ;;  %v2758_v17 = vsel %vm724_vm8, 0.0, %v716_v9  ;;  %v1824_v18 = vsel %vm724_vm8, 1.0, %v2354_v55  ;;  %vm723_vm9 = vcmp.ge.f32.partialorder %v715_v11, 0.5 }
 0x23b   : > { %v2761_v19 = vsel %vm723_vm9, 0.0, %v715_v11  ;;  %v1823_v20 = vsel %vm723_vm9, 1.0, %v2354_v55  ;;  %v746_v21 = vmul.f32 %v1824_v18, %v744_v10  ;;  %v969_v10 = vmul.f32 0.16666667, %v2751_v54 }
 0x23c   : > { %v745_v22 = vmul.f32 %v1823_v20, %v743_v12  ;;  %v968_v12 = vmul.f32 0.16666667, %v2755_v2  ;;  %v971_v27 = vmul.f32 0.16666667, %v2758_v17 }
 0x23e   : > { %v2079_v29 = vpack.c.bf16 %v746_v21, %v745_v22 }
 0x240   : > { %2080 = vmatprep.subr.bf16.mxu1 %v2079_v29 }
 0x241   : > { %2082 = vmatpush3.bf16.msra.mxu1 %v2079_v29 }
 0x242   : > { %2084 = vmatprep.subr.bf16.mxu1 %v2083_v30 }
 0x244   : > { %1978 = vmatmul.mubr.msk.f32.vlgmr.msra.gmra.mrb[0].mxu1 %vm767_vm5, %v2767_v31 }
 0x245   : > { %2086 = vmatpush3.bf16.msra.mxu1 %v2083_v30  ;;  %1980 = vmatprep.mubr.msk.f32.mxu1 %vm767_vm5, %v2772_v32  ;;  %v970_v30 = vmul.f32 0.16666667, %v2761_v19 }
 0x246   : > { %2088 = vmatprep.subr.bf16.mxu1 %v2577_v23 }
 0x248   : > { %1981 = vmatmul.mubr.msk.f32.gmra.mrb[2].mxu1 %vm767_vm5, %v2781_v33 }
 0x249   : > { %2090 = vmatpush3.bf16.msra.mxu1 %v2577_v23  ;;  %1995 = vmatprep.mubr.msk.f32.mxu1 %vm607_vm0, %v2597_v28  ;;  %v2807_v23 = vpop.permute.xlu0 %764 }
 0x24a   : > { %2092 = vmatprep.subr.bf16.mxu1 %v2091_v39 }
 0x24d   : > { %2094 = vmatpush3.bf16.msra.mxu1 %v2091_v39  ;;  %v2811_v45 = vpop.permute.xlu0 %754 }
 0x24e   : > { %2100 = vmatprep.subr.bf16.mxu1 %v2099_v40 }
 0x250   : > { %1996 = vmatmul.mubr.msk.f32.vlgmr.msra.gmra.mrb[4].mxu1 %vm607_vm0, %v2676_v58 }
 0x251   : > { %2102 = vmatpush3.bf16.msra.mxu1 %v2099_v40  ;;  %1998 = vmatprep.mubr.msk.f32.mxu1 %vm607_vm0, %v2683_v60 }
 0x252   : > { %2104 = vmatprep.subr.bf16.mxu1 %v2579_v24 }
 0x254   : > { %1999 = vmatmul.mubr.msk.f32.gmra.mrb[6].mxu1 %vm607_vm0, %v2692_v61 }
 0x255   : > { %2106 = vmatpush3.bf16.msra.mxu1 %v2579_v24  ;;  %2023 = vmatprep.mubr.msk.f32.mxu1 %vm607_vm0, %v2597_v28  ;;  %v2809_v24 = vpop.permute.xlu1 %759 }
 0x256   : > { %2108 = vmatprep.subr.bf16.mxu1 %v2107_v44 }
 0x259   : > { %2110 = vmatpush3.bf16.msra.mxu1 %v2107_v44  ;;  %v2813_v46 = vpop.permute.xlu1 %749 }
 0x25c   : > { %2024 = vmatmul.mubr.msk.f32.vlgmr.msra.gmra.mrb[8].mxu1 %vm607_vm0, %v2676_v58 }
 0x25d   : > { %2026 = vmatprep.mubr.msk.f32.mxu1 %vm607_vm0, %v2683_v60 }
 0x260   : > { %2027 = vmatmul.mubr.msk.f32.gmra.mrb[10].mxu1 %vm607_vm0, %v2692_v61 }
 0x261   : > { %2061 = vmatprep.mubr.msk.f32.mxu1 %vm767_vm5, %v2742_v36 }
 0x317   : > { %v1979_v41 = vpop.f32.mrb[0].mxu1 }
 0x318   : > { %v852_v47 = vadd.f32 %v1979_v41, %v2811_v45  ;;  %v846_v48 = vpop.f32.mrb[1].mxu1 }
 0x319   : > { %v847_v49 = vadd.f32 %v846_v48, %v2813_v46 }
 0x31a   : > { %866 = vst [vmem:[%s2818_s12 + $0x8] sm:$0xff] %v852_v47 }
 0x31b   : > { %865 = vst [vmem:[%s2818_s12] sm:$0xff] %v847_v49  ;;  %v1982_v50 = vpop.f32.mrb[2].mxu1 }
 0x31c   : > { %v862_v51 = vadd.f32 %v1982_v50, %v2807_v23  ;;  %v856_v52 = vpop.f32.mrb[3].mxu1 }
 0x31d   : > { %v857_v53 = vadd.f32 %v856_v52, %v2809_v24 }
 0x31e   : > { %v870_v57 = vadd.f32 %v862_v51, %v2556_v13 }
 0x31f   : > { %v869_v63 = vadd.f32 %v857_v53, %v2540_v4 }
 0x320   : > { %872 = vst [vmem:[%s2827_s21 + $0x8] sm:$0xff] %v870_v57 }
 0x321   : > { %871 = vst [vmem:[%s2827_s21] sm:$0xff] %v869_v63 }
 0x323   : > { %v1997_v1 = vpop.f32.mrb[4].mxu1 }
 0x324   : > { %v951_v3 = vadd.f32 %v1997_v1, %v2694_v62  ;;  %v945_v8 = vpop.f32.mrb[5].mxu1 }
 0x325   : > { %v946_v9 = vadd.f32 %v945_v8, %v2671_v56 }
 0x326   : > { %v973_v11 = vmul.f32 0.8333333, %v951_v3 }
 0x327   : > { %v972_v13 = vmul.f32 0.8333333, %v946_v9  ;;  %v2000_v18 = vpop.f32.mrb[6].mxu1 }
 0x328   : > { %v977_v4 = vadd.f32 %v973_v11, %v969_v10  ;;  %v961_v20 = vadd.f32 %v2000_v18, %v2678_v59  ;;  %v955_v21 = vpop.f32.mrb[7].mxu1 }
 0x329   : > { %v976_v22 = vadd.f32 %v972_v13, %v968_v12  ;;  %v956_v26 = vadd.f32 %v955_v21, %v2698_v0 }
 0x32a   : > { %vm981_vm10 = vcmp.ge.f32.partialorder %v977_v4, 0.5  ;;  %v975_v29 = vmul.f32 0.8333333, %v961_v20 }
 0x32b   : > { %v1834_v54 = vsel %vm981_vm10, 1.0, %v2354_v55  ;;  %vm980_vm11 = vcmp.ge.f32.partialorder %v976_v22, 0.5  ;;  %v974_v34 = vmul.f32 0.8333333, %v956_v26  ;;  %v985_v42 = vsel %vm981_vm10, 0.0, %v977_v4 }
 0x32c   : > { %v1001_v2 = vmul.f32 0.17597286, %v1834_v54  ;;  %v1833_v35 = vsel %vm980_vm11, 1.0, %v2354_v55  ;;  %v979_v37 = vadd.f32 %v975_v29, %v971_v27  ;;  %v984_v41 = vsel %vm980_vm11, 0.0, %v976_v22 }
 0x32d   : > { %v1000_v38 = vmul.f32 0.17597286, %v1833_v35  ;;  %v978_v39 = vadd.f32 %v974_v34, %v970_v30  ;;  %v1197_v53 = vmul.f32 0.16666667, %v985_v42  ;;  %v1196_v1 = vmul.f32 0.16666667, %v984_v41 }
 0x32e   : > { %v1003_v40 = vadd.f32 0.3807971, %v1001_v2  ;;  %vm983_vm12 = vcmp.ge.f32.partialorder %v979_v37, 0.5  ;;  %v1330_v41 = vld [vmem:[#allocation2 + $0x38] sm:$0xff] }
 0x32f   : > { %v1002_v43 = vadd.f32 0.3807971, %v1000_v38  ;;  %v1836_v17 = vsel %vm983_vm12, 1.0, %v2354_v55  ;;  %vm982_vm13 = vcmp.ge.f32.partialorder %v978_v39, 0.5  ;;  %v2025_v44 = vpop.f32.mrb[8].mxu1  ;;  %v987_v52 = vsel %vm983_vm12, 0.0, %v979_v37 }
 0x330   : > { %v1835_v19 = vsel %vm982_vm13, 1.0, %v2354_v55  ;;  %v1179_v47 = vadd.f32 %v2025_v44, %v2694_v62  ;;  %v1173_v48 = vpop.f32.mrb[9].mxu1  ;;  %v1005_v51 = vmul.f32 %v1836_v17, %v1003_v40  ;;  %v986_v63 = vsel %vm982_vm13, 0.0, %v978_v39  ;;  %v1329_v44 = vld [vmem:[#allocation2 + $0x18] sm:$0xff] }
 0x331   : > { %v1174_v49 = vadd.f32 %v1173_v48, %v2671_v56  ;;  %v1004_v50 = vmul.f32 %v1835_v19, %v1002_v43  ;;  %v1199_v18 = vmul.f32 0.16666667, %v987_v52  ;;  %v1198_v21 = vmul.f32 0.16666667, %v986_v63 }
 0x332   : > { %v1201_v57 = vmul.f32 0.8333333, %v1179_v47  ;;  %v2115_v48 = vpack.c.bf16 %v1330_v41, %v1329_v44 }
 0x333   : > { %v1200_v3 = vmul.f32 0.8333333, %v1174_v49  ;;  %v2028_v8 = vpop.f32.mrb[10].mxu1  ;;  %v2095_v9 = vpack.c.bf16 %v1005_v51, %v1004_v50  ;;  %v1333_v49 = vld [vmem:[#allocation2 + $0x98] sm:$0xff] }
 0x334   : > { %v1205_v10 = vadd.f32 %v1201_v57, %v1197_v53  ;;  %v1189_v11 = vadd.f32 %v2028_v8, %v2678_v59  ;;  %v1183_v12 = vpop.f32.mrb[11].mxu1  ;;  %v1334_v50 = vld [vmem:[#allocation2 + $0xb8] sm:$0xff] }
 0x335   : > { %v1204_v13 = vadd.f32 %v1200_v3, %v1196_v1  ;;  %v1184_v4 = vadd.f32 %v1183_v12, %v2698_v0  ;;  %2096 = vmatprep.subr.bf16.mxu0 %v2095_v9  ;;  %v2123_v51 = vpack.c.bf16 %v1334_v50, %v1333_v49 }
 0x336   : > { %vm1209_vm14 = vcmp.ge.f32.partialorder %v1205_v10, 0.5  ;;  %v1203_v20 = vmul.f32 0.8333333, %v1189_v11  ;;  %2098 = vmatpush3.bf16.msra.mxu0 %v2095_v9 }
 0x337   : > { %v2847_v22 = vsel %vm1209_vm14, 0.0, %v1205_v10  ;;  %v1852_v26 = vsel %vm1209_vm14, 1.0, %v2354_v55  ;;  %vm1208_vm15 = vcmp.ge.f32.partialorder %v1204_v13, 0.5  ;;  %v1202_v27 = vmul.f32 0.8333333, %v1184_v4 }
 0x338   : > { %v1229_v29 = vmul.f32 0.17597286, %v1852_v26  ;;  %v2850_v30 = vsel %vm1208_vm15, 0.0, %v1204_v13  ;;  %v1851_v54 = vsel %vm1208_vm15, 1.0, %v2354_v55  ;;  %v1207_v34 = vadd.f32 %v1203_v20, %v1199_v18 }
 0x339   : > { %v1228_v2 = vmul.f32 0.17597286, %v1851_v54  ;;  %v1206_v35 = vadd.f32 %v1202_v27, %v1198_v21  ;;  %2006 = vmatmul.mubr.msk.f32.vlgmr.msra.gmra.mrb[4].mxu0 %vm767_vm5, %v2767_v31  ;;  %v1425_v26 = vmul.f32 0.16666667, %v2847_v22 }
 0x33a   : > { %v1231_v37 = vadd.f32 0.3807971, %v1229_v29  ;;  %vm1211_vm1 = vcmp.ge.f32.partialorder %v1207_v34, 0.5  ;;  %2008 = vmatprep.mubr.msk.f32.mxu0 %vm767_vm5, %v2772_v32  ;;  %v1424_v29 = vmul.f32 0.16666667, %v2850_v30 }
 0x33b   : > { %v1230_v38 = vadd.f32 0.3807971, %v1228_v2  ;;  %v2857_v39 = vsel %vm1211_vm1, 0.0, %v1207_v34  ;;  %v1854_v40 = vsel %vm1211_vm1, 1.0, %v2354_v55  ;;  %vm1210_vm2 = vcmp.ge.f32.partialorder %v1206_v35, 0.5 }
 0x33c   : > { %v2860_v42 = vsel %vm1210_vm2, 0.0, %v1206_v35  ;;  %v1853_v43 = vsel %vm1210_vm2, 1.0, %v2354_v55  ;;  %v1233_v17 = vmul.f32 %v1854_v40, %v1231_v37 }
 0x33d   : > { %2009 = vmatmul.mubr.msk.f32.gmra.mrb[6].mxu0 %vm767_vm5, %v2781_v33  ;;  %v1232_v19 = vmul.f32 %v1853_v43, %v1230_v38  ;;  %v1426_v22 = vmul.f32 0.16666667, %v2860_v42 }
 0x33e   : > { %2033 = vmatprep.mubr.msk.f32.mxu0 %vm767_vm5, %v2742_v36 }
 0x33f   : > { %v2111_v47 = vpack.c.bf16 %v1233_v17, %v1232_v19 }
 0x341   : > { %2112 = vmatprep.subr.bf16.mxu0 %v2111_v47 }
 0x342   : > { %2114 = vmatpush3.bf16.msra.mxu0 %v2111_v47 }
 0x343   : > { %2116 = vmatprep.subr.bf16.mxu0 %v2115_v48 }
 0x345   : > { %2034 = vmatmul.mubr.msk.f32.vlgmr.msra.gmra.mrb[8].mxu0 %vm767_vm5, %v2767_v31 }
 0x346   : > { %2118 = vmatpush3.bf16.msra.mxu0 %v2115_v48  ;;  %2036 = vmatprep.mubr.msk.f32.mxu0 %vm767_vm5, %v2772_v32 }
 0x347   : > { %2120 = vmatprep.subr.bf16.mxu0 %v2581_v25 }
 0x349   : > { %2037 = vmatmul.mubr.msk.f32.gmra.mrb[10].mxu0 %vm767_vm5, %v2781_v33 }
 0x34a   : > { %2122 = vmatpush3.bf16.msra.mxu0 %v2581_v25  ;;  %2051 = vmatprep.mubr.msk.f32.mxu0 %vm607_vm0, %v2597_v28 }
 0x34b   : > { %2124 = vmatprep.subr.bf16.mxu0 %v2123_v51 }
 0x34e   : > { %2126 = vmatpush3.bf16.msra.mxu0 %v2123_v51 }
 0x351   : > { %2052 = vmatmul.mubr.msk.f32.vlgmr.msra.gmra.mrb[12].mxu0 %vm607_vm0, %v2676_v58 }
 0x352   : > { %2054 = vmatprep.mubr.msk.f32.mxu0 %vm607_vm0, %v2683_v60 }
 0x355   : > { %2055 = vmatmul.mubr.msk.f32.gmra.mrb[14].mxu0 %vm607_vm0, %v2692_v61 }
 0x40c   : > { %v2007_v36 = vpop.f32.mrb[4].mxu0 }
 0x40d   : > { %v1078_v52 = vadd.f32 %v2007_v36, %v2811_v45  ;;  %v1072_v25 = vpop.f32.mrb[5].mxu0 }
 0x40e   : > { %v1073_v28 = vadd.f32 %v1072_v25, %v2813_v46 }
 0x40f   : > { %1842 = vst [vmem:[%s2818_s12 + $0x18] sm:$0xff] %v1078_v52 }
 0x410   : > { %1841 = vst [vmem:[%s2818_s12 + $0x10] sm:$0xff] %v1073_v28  ;;  %v2010_v53 = vpop.f32.mrb[6].mxu0 }
 0x411   : > { %v1088_v58 = vadd.f32 %v2010_v53, %v2807_v23  ;;  %v1082_v57 = vpop.f32.mrb[7].mxu0 }
 0x412   : > { %v1083_v63 = vadd.f32 %v1082_v57, %v2809_v24 }
 0x413   : > { %v1097_v60 = vadd.f32 %v2559_v14, %v1088_v58 }
 0x414   : > { %v1096_v61 = vadd.f32 %v2543_v5, %v1083_v63 }
 0x415   : > { %1846 = vst [vmem:[%s2827_s21 + $0x18] sm:$0xff] %v1097_v60 }
 0x416   : > { %1845 = vst [vmem:[%s2827_s21 + $0x10] sm:$0xff] %v1096_v61 }
 0x418   : > { %v2035_v1 = vpop.f32.mrb[8].mxu0 }
 0x419   : > { %v1306_v3 = vadd.f32 %v2035_v1, %v2811_v45  ;;  %v1300_v8 = vpop.f32.mrb[9].mxu0 }
 0x41a   : > { %v1301_v9 = vadd.f32 %v1300_v8, %v2813_v46 }
 0x41b   : > { %1860 = vst [vmem:[%s2818_s12 + $0x28] sm:$0xff] %v1306_v3 }
 0x41c   : > { %1859 = vst [vmem:[%s2818_s12 + $0x20] sm:$0xff] %v1301_v9  ;;  %v2038_v10 = vpop.f32.mrb[10].mxu0 }
 0x41d   : > { %v1316_v11 = vadd.f32 %v2038_v10, %v2807_v23  ;;  %v1310_v12 = vpop.f32.mrb[11].mxu0 }
 0x41e   : > { %v1311_v14 = vadd.f32 %v1310_v12, %v2809_v24 }
 0x41f   : > { %v1325_v13 = vadd.f32 %v2562_v15, %v1316_v11 }
 0x420   : > { %v1324_v5 = vadd.f32 %v2546_v6, %v1311_v14 }
 0x421   : > { %1864 = vst [vmem:[%s2827_s21 + $0x28] sm:$0xff] %v1325_v13 }
 0x422   : > { %1863 = vst [vmem:[%s2827_s21 + $0x20] sm:$0xff] %v1324_v5 }
 0x424   : > { %v2053_v18 = vpop.f32.mrb[12].mxu0 }
 0x425   : > { %v1407_v4 = vadd.f32 %v2053_v18, %v2694_v62  ;;  %v1401_v20 = vpop.f32.mrb[13].mxu0  ;;  %v1427_v62 = vmul.f32 0.16666667, %v2857_v39 }
 0x426   : > { %v1402_v21 = vadd.f32 %v1401_v20, %v2671_v56 }
 0x427   : > { %v1429_v27 = vmul.f32 0.8333333, %v1407_v4 }
 0x428   : > { %v1428_v54 = vmul.f32 0.8333333, %v1402_v21  ;;  %v2056_v34 = vpop.f32.mrb[14].mxu0 }
 0x429   : > { %v1433_v2 = vadd.f32 %v1429_v27, %v1425_v26  ;;  %v1417_v15 = vadd.f32 %v2056_v34, %v2678_v59  ;;  %v1411_v35 = vpop.f32.mrb[15].mxu0 }
 0x42a   : > { %v1432_v6 = vadd.f32 %v1428_v54, %v1424_v29  ;;  %v1412_v37 = vadd.f32 %v1411_v35, %v2698_v0 }
 0x42b   : > { %vm1437_vm0 = vcmp.ge.f32.partialorder %v1433_v2, 0.5  ;;  %v1431_v38 = vmul.f32 0.8333333, %v1417_v15 }
 0x42c   : > { %v1870_v56 = vsel %vm1437_vm0, 1.0, %v2354_v55  ;;  %vm1436_vm3 = vcmp.ge.f32.partialorder %v1432_v6, 0.5  ;;  %v1430_v40 = vmul.f32 0.8333333, %v1412_v37 }
 0x42d   : > { %v1457_v30 = vmul.f32 0.17597286, %v1870_v56  ;;  %v1869_v43 = vsel %vm1436_vm3, 1.0, %v2354_v55  ;;  %v1435_v17 = vadd.f32 %v1431_v38, %v1427_v62 }
 0x42e   : > { %v1456_v44 = vmul.f32 0.17597286, %v1869_v43  ;;  %v1434_v59 = vadd.f32 %v1430_v40, %v1426_v22 }
 0x42f   : > { %v1459_v41 = vadd.f32 0.3807971, %v1457_v30  ;;  %vm1439_vm4 = vcmp.ge.f32.partialorder %v1435_v17, 0.5 }
 0x430   : > { %v1458_v19 = vadd.f32 0.3807971, %v1456_v44  ;;  %v1872_v0 = vsel %vm1439_vm4, 1.0, %v2354_v55  ;;  %vm1438_vm6 = vcmp.ge.f32.partialorder %v1434_v59, 0.5 }
 0x431   : > { %v1461_v39 = vmul.f32 %v1872_v0, %v1459_v41  ;;  %v1871_v47 = vsel %vm1438_vm6, 1.0, %v2354_v55 }
 0x432   : > { %v1460_v48 = vmul.f32 %v1871_v47, %v1458_v19 }
 0x434   : > { %v2127_v42 = vpack.c.bf16 %v1461_v39, %v1460_v48 }
 0x436   : > { %2128 = vmatprep.subr.bf16.mxu1 %v2127_v42 }
 0x437   : > { %2130 = vmatpush3.bf16.msra.mxu1 %v2127_v42 }
 0x43a   : > { %2062 = vmatmul.mubr.msk.f32.vlgmr.msra.gmra.mrb[12].mxu1 %vm767_vm5, %v2767_v31 }
 0x43b   : > { %2064 = vmatprep.mubr.msk.f32.mxu1 %vm767_vm5, %v2772_v32 }
 0x43e   : > { %2065 = vmatmul.mubr.msk.f32.gmra.mrb[14].mxu1 %vm767_vm5, %v2781_v33 }
 0x50d   : > { %v2063_v49 = vpop.f32.mrb[12].mxu1 }
 0x50e   : > { %v1534_v55 = vadd.f32 %v2063_v49, %v2811_v45  ;;  %v1528_v50 = vpop.f32.mrb[13].mxu1 }
 0x50f   : > { %v1529_v51 = vadd.f32 %v1528_v50, %v2813_v46 }
 0x510   : > { %1878 = vst [vmem:[%s2818_s12 + $0x38] sm:$0xff] %v1534_v55 }
 0x511   : > { %1877 = vst [vmem:[%s2818_s12 + $0x30] sm:$0xff] %v1529_v51  ;;  %v2066_v36 = vpop.f32.mrb[14].mxu1 }
 0x512   : > { %v1544_v31 = vadd.f32 %v2066_v36, %v2807_v23  ;;  %v1538_v52 = vpop.f32.mrb[15].mxu1 }
 0x513   : > { %v1539_v25 = vadd.f32 %v1538_v52, %v2809_v24 }
 0x514   : > { %v1553_v32 = vadd.f32 %v2565_v16, %v1544_v31 }
 0x515   : > { %v1552_v28 = vadd.f32 %v2549_v7, %v1539_v25 }
 0x516   : > { %1882 = vst [vmem:[%s2827_s21 + $0x38] sm:$0xff] %v1553_v32 }
 0x517   : > { %1881 = vst [vmem:[%s2827_s21 + $0x30] sm:$0xff] %v1552_v28 }
 0x518   : > { %s1885_s20 = sshll.u32 %s2324_s28, 2  ;;  %s1593_s22 = sshll.u32 %s2827_s21, 4  ;;  %s1594_s22 = int_to_ptr.vmem [resolvable:$true] %s1593_s22 }
 0x519   : > { %s1574_s11 = sadd.s32 %s2320_s27, %s1885_s20  ;;  %s2355_s19 = smov 256  }
 0x51a   : > { %s1886_s14 = sshll.u32 %s1574_s11, 7  ;;  %2140 = sst [smem:[#allocation13]] (%p2473_p9), %s2355_s19 }
 0x51b   : > { %s1576_s13 = scalar_lea.hbm %s3007_s6, %s1886_s14  ;;  %s2356_s23 = smov 1024  }
 0x51c   : > { %2141 = sst [smem:[#allocation13 + $0x1]] (%p2473_p9), %s2356_s23  ;;  %s2357_s10 = smov 2  }
 0x51d   : > { %2142 = sst [smem:[#allocation13 + $0x2]] (%p2473_p9), %s2357_s10  ;;  %s2358_s28 = smov 128  }
 0x51e   : > { %2143 = sst [smem:[#allocation13 + $0x3]] (%p2473_p9), %s2358_s28  ;;  %s2359_s27 = smov 8  }
 0x51f   : > { %2144 = sst [smem:[#allocation13 + $0x4]] (%p2473_p9), %s2355_s19  ;;  %s2360_s15 = smov [#allocation12]  }
 0x520   : > { %2145 = sst [smem:[#allocation13 + $0x5]] (%p2473_p9), %s2359_s27  ;;  %s2361_s21 = smov 0  }
 0x521   : > { %2146 = dma.general (%p2473_p9), %s1594_s22, 1024, %s1576_s13, %s1558_s26, %s2360_s15, [#allocation13], %s2361_s21, 0  }
 0x522   : > { %s1622_s18 = scalar_lea.hbm %s3008_s7, %s1886_s14  ;;  %s1639_s9 = sshll.u32 %s2818_s12, 4  ;;  %s1640_s9 = int_to_ptr.vmem [resolvable:$true] %s1639_s9 }
 0x523   : > { %s2362_s19 = smov 256   ;;  %s2363_s23 = smov 1024  }
 0x524   : > { %2147 = sst [smem:[#allocation15]] (%p2473_p9), %s2362_s19  ;;  %s2364_s26 = smov 2  }
 0x525   : > { %2148 = sst [smem:[#allocation15 + $0x1]] (%p2473_p9), %s2363_s23  ;;  %s2365_s22 = smov 128  }
 0x526   : > { %2149 = sst [smem:[#allocation15 + $0x2]] (%p2473_p9), %s2364_s26  ;;  %s2366_s13 = smov 8  }
 0x527   : > { %2150 = sst [smem:[#allocation15 + $0x3]] (%p2473_p9), %s2365_s22  ;;  %s2367_s14 = smov [#allocation14]  }
 0x528   : > { %2151 = sst [smem:[#allocation15 + $0x4]] (%p2473_p9), %s2362_s19  ;;  %s2368_s12 = smov 0  }
 0x529   : > { %2152 = sst [smem:[#allocation15 + $0x5]] (%p2473_p9), %s2366_s13 }
 0x52a   : > { %2153 = dma.general (%p2473_p9), %s1640_s9, 1024, %s1622_s18, %s1563_s17, %s2367_s14, [#allocation15], %s2368_s12, 0  }
 0x52b PF: > { %s3024_s10 = sld [smem:[#allocation20_spill]]  ;;  %p2163_p5 = scmp.ge.s32.totalorder %s2336_s8, 2 }
 0x52d   : > { %p2157_p6 = pnand %p2163_p5, %p2480_p12 }
 0x531   : > { %s1667_s27 = sand.u32 1, %s3024_s10  }
 0x532   : > { %s1668_s15 = scalar_lea.sflag [#allocation6], %s1667_s27 }
 0x533   : > { %2299 = dma.done.wait (!%p2157_p6), %s1668_s15, 1024  }
 0x534   : > { %2301 = vsyncadd (!%p2157_p6), %s1668_s15, 4294966272  ;;  %s1677_s21 = scalar_lea.sflag [#allocation9], %s1667_s27 }
 0x535   : > { %2303 = dma.done.wait (!%p2157_p6), %s1677_s21, 1024  }
 0x536   : > { %2305 = vsyncadd (!%p2157_p6), %s1677_s21, 4294966272  ;;  %s27_s8 = sadd.s32 1, %s2336_s8   ;;  %s3026_s16 = sld [smem:[#allocation21_spill]] }
 0x537   : > { %p24_p7 = scmp.ge.s32.totalorder %s27_s8, 6   ;;  %s3027_s26 = sld [smem:[#allocation25_spill]] }
 0x538   : > { %s3028_s17 = sld [smem:[#allocation22_spill]]  ;;  %s3029_s20 = sld [smem:[#allocation23_spill]] }
 0x539   : > { %s3030_s24 = smov %s2312_s25  ;;  %s3032_s27 = smov %s2328_s29 }
 0x53a   : > { %s3033_s28 = smov %s2332_s30  ;;  %26 = sbr.rel (!%p24_p7) target bundleno = 9 (0x9), region = 133 }
 0x53c   : > { %s3031_s25 = smov %s3026_s16 }
 0x53e   : > { %s3034_s29 = smov %s3028_s17  ;;  %s3035_s30 = smov %s3029_s20 }
 0x541   :  { %1682 = vsyncpa [#allocation5], 1 }
 0x542   :  { %1684 = vsyncpa [#allocation5 + $0x1], 1 }
 0x543   :  { %1685 = vsyncpa [#allocation6], 1 }
 0x544   :  { %1687 = vsyncpa [#allocation6 + $0x1], 1 }
 0x545   :  { %1688 = vsyncpa [#allocation9], 1 }
 0x546   :  { %1690 = vsyncpa [#allocation9 + $0x1], 1 }

</bundles_post_ra>
